<compile_context>
chip_gen: v5e
topology: v5e:2x2
jax: 0.10.0
libtpu: 0.0.40
codegen_flags: <defaults>
</compile_context>

<pallas_src>
import numpy as np
import jax
import jax.numpy as jnp
from jax.experimental import pallas as pl
from jax.experimental.pallas import tpu as pltpu

_NEG_BIG = -1e30  # finite "masked" value; avoids NaN when a row is fully padded


# ----------------------------------------------------------------------------
# Glue: meshes, sr_attn_mask, window gather (mirrors the torch module exactly)
# ----------------------------------------------------------------------------
def _build_mesh(w):
    ii, jj = np.nonzero(np.ones((w, w), dtype=np.float32))
    index = (jj - ii) % w  # torch negative indices wrap -> mod w
    mx = np.broadcast_to(index[:, None], (w * w, w * w)).copy()  # meshgrid 'ij'
    my = np.broadcast_to(index[None, :], (w * w, w * w)).copy()
    return mx, my


def _build_sr_mask(w, L):
    # attn_mask_w = [x if x > 0.5 else 1 - x for x in arange(0, 1, 1/w)]  (fp16)
    vals = np.arange(0.0, 1.0, 1.0 / w)
    vals = np.where(vals > 0.5, vals, 1.0 - vals).astype(np.float16)
    mw = vals.reshape(1, w)
    m = (mw.T * mw).astype(np.float16) - np.float16(1.0)          # (w, w)
    m = np.tile(m[None], (L, 1, 1)).reshape(L * w * w)            # (L_win,)
    return jnp.asarray(m, jnp.float32)


def _gather_windows(x, w, mx, my):
    """key/value cyclic-shift gather: (B, L, C_win) -> (B, L*w*w, C_win)."""
    b, L, c_win = x.shape
    c = c_win // (w * w)
    xr = x.reshape(b, L, w, w, c)
    g = xr[:, :, mx, my, :]                                  # (b, L, w*w, w*w, c)
    g = g.reshape(b, L, w, w, w, w, c)
    g = jnp.transpose(g, (0, 1, 2, 4, 3, 5, 6))
    return g.reshape(b, L * w * w, c_win)
    # TODO(synk): this w^2-inflated gather could be moved into the kernel as a
    # manual-DMA / pltpu.roll cyclic shift to cut HBM read traffic further.


# ----------------------------------------------------------------------------
# Generation-aware block planning
# ----------------------------------------------------------------------------
def _vmem_bytes(bblk, tk, L, L_win, c_win, bias_rows, has_pad,
                pval_bytes, pattn_bytes):
    """Conservative per-step VMEM footprint (inputs/outputs double-buffered)."""
    n_kv = L_win // tk
    fp = 0
    fp += 2 * bblk * L * c_win * 2                 # q block (bf16), 2 buffers
    fp += 2 * 2 * bblk * tk * c_win * 2            # k + v tiles (bf16), 2 buffers
    fp += 2 * bias_rows * tk * 4                   # bias tile (0 if absent)
    fp += (2 * bblk * tk * 4) if has_pad else 0    # padding tile
    fp += 2 * bblk * L * c_win * pval_bytes        # p_val output block
    fp += 2 * bblk * L * L_win * pattn_bytes       # p_attn output block (resident)
    fp += bblk * L * L_win * 4                     # per-tile exp scratch
    fp += n_kv * bblk * L * 4                      # running-max history
    fp += 2 * bblk * L * 4 + bblk * L * c_win * 4  # m, l, acc scratch
    return fp


def _plan(b, L, L_win, c_win, bias_rows, has_pad, pval_bytes, pattn_bytes,
          max_kv_tile=None):
    try:
        info = pltpu.get_tpu_info()
        vmem_cap = int(getattr(info, "vmem_capacity_bytes", 0)) or (64 << 20)
    except Exception:
        vmem_cap = 64 << 20                        # conservative fallback
    vmem_limit = int(min(vmem_cap * 3 // 4, 100 << 20))
    budget = int(vmem_limit * 0.9)
    # Small physical VMEM -> v7x-like part (64 MiB / TC, 2 TCs): keep >= 2
    # batch grid steps so the 'parallel' axis can shard across cores.
    # v5e/v6e (128 MiB, single TC): maximize the block per step instead.
    multi_core = vmem_cap <= (96 << 20)

    # kv tile: largest lane-dense (128-multiple) divisor of L_win that fits.
    cands = sorted({t for t in (L_win, 2048, 1024, 512, 256, 128)
                    if t <= L_win and L_win % t == 0}, reverse=True)
    if max_kv_tile is not None:
        small = [t for t in cands if t <= max_kv_tile]
        cands = small or [cands[-1]]
    tk = cands[-1]
    for t in cands:
        if _vmem_bytes(1, t, L, L_win, c_win, bias_rows, has_pad,
                       pval_bytes, pattn_bytes) <= budget:
            tk = t
            break

    bblk = 1
    for cand in [d for d in range(b, 0, -1) if b % d == 0]:
        if multi_core and b >= 2 and cand > b // 2:
            continue
        if _vmem_bytes(cand, tk, L, L_win, c_win, bias_rows, has_pad,
                       pval_bytes, pattn_bytes) <= budget:
            bblk = cand
            break
    return bblk, tk, vmem_limit


# ----------------------------------------------------------------------------
# Pallas kernel: flash-style streaming over kv tiles, exact softmax out
# ----------------------------------------------------------------------------
def _make_kernel(n_kv, tk, has_bias, has_pad):
    def kernel(*refs):
        idx = 0
        q_ref = refs[idx]; idx += 1                 # (bblk, L, c_win)   bf16
        k_ref = refs[idx]; idx += 1                 # (bblk, tk, c_win)  bf16
        v_ref = refs[idx]; idx += 1                 # (bblk, tk, c_win)  bf16
        bias_ref = None
        if has_bias:
            bias_ref = refs[idx]; idx += 1          # (Lb, tk) f32, Lb in {1, L}
        pad_ref = None
        if has_pad:
            pad_ref = refs[idx]; idx += 1           # (bblk, 1, tk) f32
        pval_ref = refs[idx]; idx += 1              # (bblk, L, c_win)
        pattn_ref = refs[idx]; idx += 1             # (bblk, L, L_win)
        e_scr, mh_scr, m_scr, l_scr, acc_scr = refs[idx:idx + 5]

        j = pl.program_id(1)

        @pl.when(j == 0)
        def _init():
            m_scr[...] = jnp.full(m_scr.shape, _NEG_BIG, m_scr.dtype)
            l_scr[...] = jnp.zeros(l_scr.shape, l_scr.dtype)
            acc_scr[...] = jnp.zeros(acc_scr.shape, acc_scr.dtype)

        # scores for this kv tile; q is pre-scaled by 1/(w*w), MXU f32 accumulate
        s = jnp.einsum('blc,bmc->blm', q_ref[...], k_ref[...],
                       preferred_element_type=jnp.float32)
        if has_bias:
            s = s + bias_ref[...]           # (Lb, tk) broadcasts over batch (and L)
        if has_pad:
            s = s + pad_ref[...]            # (bblk, 1, tk) additive -1e30 / 0

        # online-softmax recurrence
        m_prev = m_scr[...]
        m_new = jnp.maximum(m_prev, jnp.max(s, axis=-1, keepdims=True))
        alpha = jnp.exp(m_prev - m_new)
        e = jnp.exp(s - m_new)                               # (bblk, L, tk)
        e_scr[j] = e                                         # keep for exact p_attn
        mh_scr[j] = m_new                                    # max used for this tile
        l_scr[...] = alpha * l_scr[...] + jnp.sum(e, axis=-1, keepdims=True)
        acc_scr[...] = alpha * acc_scr[...] + jnp.einsum(
            'blm,bmc->blc', e.astype(v_ref.dtype), v_ref[...],
            preferred_element_type=jnp.float32)
        m_scr[...] = m_new

        # TODO(synk): nn.Dropout(p=0.1) is treated as identity (eval mode);
        # training-mode dropout would use pltpu.prng_seed / pltpu.prng_random_bits.

        @pl.when(j == n_kv - 1)
        def _finalize():
            inv_l = 1.0 / l_scr[...]        # exact normalization (true softmax)
            m_fin = m_scr[...]
            pval_ref[...] = (acc_scr[...] * inv_l).astype(pval_ref.dtype)
            # exact p_attn: exp(s - m_tile) * exp(m_tile - m_final) / l
            for jj in range(n_kv):          # static loop -> static lane slices
                corr = jnp.exp(mh_scr[jj] - m_fin) * inv_l
                pattn_ref[:, :, jj * tk:(jj + 1) * tk] = (
                    e_scr[jj] * corr).astype(pattn_ref.dtype)
    return kernel


def cswin_attention(query, key, value, window_size, padding_mask=None,
                    rel_pos=None, use_attn_mask=True,
                    compute_dtype=jnp.bfloat16, attn_dtype=jnp.float32,
                    max_kv_tile=None):
    """Pallas implementation of Attention.forward.  Returns (p_val, p_attn)."""
    b, L, c_win = query.shape

    if window_size == 1:
        L_win = L
        scale = 1.0
        k_g = key.astype(compute_dtype)
        v_g = value.astype(compute_dtype)
        sr_row = None
    else:
        w = window_size
        L_win = L * w * w
        scale = 1.0 / (w * w)
        mx, my = _build_mesh(w)
        # cast BEFORE the gather so the w^2-inflated K/V live in HBM as bf16
        k_g = _gather_windows(key.astype(compute_dtype), w, mx, my)
        v_g = _gather_windows(value.astype(compute_dtype), w, mx, my)
        sr_row = (scale * _build_sr_mask(w, L)) if use_attn_mask else None

    # Additive bias folded on the host: pre-scaled sr mask (+ rel_pos if given).
    # With no rel_pos the bias is a single (1, L_win) row broadcast in-kernel.
    if rel_pos is not None:
        bias = rel_pos.astype(jnp.float32)
        if sr_row is not None:
            bias = bias + sr_row[None, :]
        bias_rows = L
    elif sr_row is not None:
        bias = sr_row[None, :]
        bias_rows = 1
    else:
        bias = None
        bias_rows = 0
    has_bias = bias is not None

    # Fold the 1/(w*w) scale into q (and sr mask above): preserves
    # (scores + mask) / (w*w) exactly while touching fewer elements.
    q_c = (query.astype(jnp.float32) * scale).astype(compute_dtype)

    has_pad = padding_mask is not None
    pad_bias = None
    if has_pad:
        pm = padding_mask.astype(bool)
        if window_size != 1:
            pm = jnp.repeat(pm, window_size * window_size, axis=-1)  # (b, L_win)
        pad_bias = jnp.where(pm, _NEG_BIG, 0.0).astype(jnp.float32)[:, None, :]

    pval_bytes = np.dtype(query.dtype).itemsize
    pattn_bytes = np.dtype(attn_dtype).itemsize
    bblk, tk, vmem_limit = _plan(b, L, L_win, c_win, bias_rows, has_pad,
                                 pval_bytes, pattn_bytes, max_kv_tile)
    n_kv = L_win // tk

    in_specs = [
        pl.BlockSpec((bblk, L, c_win), lambda i, j: (i, 0, 0)),       # q (resident)
        pl.BlockSpec((bblk, tk, c_win), lambda i, j: (i, j, 0)),      # k tile
        pl.BlockSpec((bblk, tk, c_win), lambda i, j: (i, j, 0)),      # v tile
        # note: pl.Buffered(3) on k/v would deepen pipelining if DMA is exposed
    ]
    args = [q_c, k_g, v_g]
    if has_bias:
        in_specs.append(pl.BlockSpec((bias_rows, tk), lambda i, j: (0, j)))
        args.append(bias)
    if has_pad:
        in_specs.append(pl.BlockSpec((bblk, 1, tk), lambda i, j: (i, 0, j)))
        args.append(pad_bias)

    kernel = _make_kernel(n_kv, tk, has_bias, has_pad)

    p_val, p_attn = pl.pallas_call(
        kernel,
        out_shape=(
            jax.ShapeDtypeStruct((b, L, c_win), query.dtype),
            jax.ShapeDtypeStruct((b, L, L_win), attn_dtype),
        ),
        grid_spec=pltpu.PrefetchScalarGridSpec(
            num_scalar_prefetch=0,
            grid=(b // bblk, n_kv),
            in_specs=in_specs,
            out_specs=[
                pl.BlockSpec((bblk, L, c_win), lambda i, j: (i, 0, 0)),
                pl.BlockSpec((bblk, L, L_win), lambda i, j: (i, 0, 0)),
            ],
            scratch_shapes=[
                pltpu.VMEM((n_kv, bblk, L, tk), jnp.float32),  # per-tile exp
                pltpu.VMEM((n_kv, bblk, L, 1), jnp.float32),   # per-tile running max
                pltpu.VMEM((bblk, L, 1), jnp.float32),         # m
                pltpu.VMEM((bblk, L, 1), jnp.float32),         # l
                pltpu.VMEM((bblk, L, c_win), jnp.float32),     # acc
            ],
        ),
        compiler_params=pltpu.CompilerParams(
            dimension_semantics=("parallel", "arbitrary"),
            vmem_limit_bytes=vmem_limit),
    )(*args)
    return p_val, p_attn


# ----------------------------------------------------------------------------
# Pure-JAX reference (mirrors the torch forward) for correctness checking.
# compute_dtype lets the reference use the same bf16 matmul operands as the
# kernel so the comparison isolates kernel mechanics from dtype rounding.
# ----------------------------------------------------------------------------
def attention_reference(query, key, value, window_size, padding_mask=None,
                        rel_pos=None, use_attn_mask=True,
                        compute_dtype=jnp.float32):
    b, L, c_win = query.shape
    if window_size == 1:
        scale = 1.0
        kg, vg = key, value
        sr = None
    else:
        w = window_size
        scale = 1.0 / (w * w)
        mx, my = _build_mesh(w)
        kg = _gather_windows(key, w, mx, my)
        vg = _gather_windows(value, w, mx, my)
        sr = _build_sr_mask(w, L) if use_attn_mask else None

    qc = (query.astype(jnp.float32) * scale).astype(compute_dtype)
    kc = kg.astype(compute_dtype)
    vc = vg.astype(compute_dtype)

    s = jnp.einsum('blc,bmc->blm', qc, kc, preferred_element_type=jnp.float32)
    if sr is not None:
        s = s + scale * sr[None, None, :]
    if padding_mask is not None:
        pm = padding_mask.astype(bool)
        if window_size != 1:
            pm = jnp.repeat(pm, window_size * window_size, axis=-1)
        s = jnp.where(pm[:, None, :], _NEG_BIG, s)
    if rel_pos is not None:
        s = s + rel_pos[None].astype(jnp.float32)

    p = jax.nn.softmax(s, axis=-1)
    pv = jnp.einsum('blm,bmc->blc', p.astype(compute_dtype), vc,
                    preferred_element_type=jnp.float32)
    return pv.astype(query.dtype), p


if __name__ == "__main__":
    kq, kk, kv, kr = jax.random.split(jax.random.PRNGKey(0), 4)

    # ---- windowed case: b=2, L=64, w=2, c=32 -> c_win=128, L_win=256 ----
    b, L, w, c = 2, 64, 2, 32
    c_win = c * w * w
    q = 0.3 * jax.random.normal(kq, (b, L, c_win), jnp.float32)
    k = 0.3 * jax.random.normal(kk, (b, L, c_win), jnp.float32)
    v = jax.random.normal(kv, (b, L, c_win), jnp.float32)
    rel_pos = 0.1 * jax.random.normal(kr, (L, L * w * w), jnp.float32)

    # multi kv-tile (online-softmax) path, per-row rel_pos bias
    pv_k, pa_k = cswin_attention(q, k, v, window_size=w, rel_pos=rel_pos,
                                 max_kv_tile=128)
    jax.block_until_ready((pv_k, pa_k))
    pv_r, pa_r = attention_reference(q, k, v, window_size=w, rel_pos=rel_pos,
                                     compute_dtype=jnp.bfloat16)
    assert float(jnp.max(jnp.abs(pv_k - pv_r))) < 2e-2, "p_val mismatch (windowed)"
    assert float(jnp.max(jnp.abs(pa_k - pa_r))) < 1e-2, "p_attn mismatch (windowed)"

    # single kv-tile path, sr-mask-only bias (single broadcast row), no rel_pos
    pv_k2, pa_k2 = cswin_attention(q, k, v, window_size=w)
    jax.block_until_ready((pv_k2, pa_k2))
    pv_r2, pa_r2 = attention_reference(q, k, v, window_size=w,
                                       compute_dtype=jnp.bfloat16)
    assert float(jnp.max(jnp.abs(pv_k2 - pv_r2))) < 2e-2, "p_val mismatch (sr only)"
    assert float(jnp.max(jnp.abs(pa_k2 - pa_r2))) < 1e-2, "p_attn mismatch (sr only)"

    # ---- window_size = 1 (plain attention) with a padding mask ----
    b1, L1, c1 = 2, 256, 128
    kq1, kk1, kv1 = jax.random.split(jax.random.PRNGKey(1), 3)
    q1 = 0.3 * jax.random.normal(kq1, (b1, L1, c1), jnp.float32)
    k1 = 0.3 * jax.random.normal(kk1, (b1, L1, c1), jnp.float32)
    v1 = jax.random.normal(kv1, (b1, L1, c1), jnp.float32)
    pad = jnp.zeros((b1, L1), bool).at[1, -32:].set(True)

    pv1, pa1 = cswin_attention(q1, k1, v1, window_size=1, padding_mask=pad,
                               max_kv_tile=128)
    jax.block_until_ready((pv1, pa1))
    rv1, ra1 = attention_reference(q1, k1, v1, window_size=1, padding_mask=pad,
                                   compute_dtype=jnp.bfloat16)
    assert float(jnp.max(jnp.abs(pv1 - rv1))) < 2e-2, "p_val mismatch (padded)"
    assert float(jnp.max(jnp.abs(pa1 - ra1))) < 1e-2, "p_attn mismatch (padded)"
    # padded key columns must receive ~zero attention
    assert float(jnp.max(pa1[1, :, -32:])) < 1e-6, "padding not applied"

    print("KERNEL_OK")
</pallas_src>

<mosaic_0001>
module attributes {stable_mosaic.version = 11 : i64} {
  func.func @kernel(%arg0: i32, %arg1: i32, %arg2: memref<1x64x128xbf16, #tpu.memory_space<vmem>>, %arg3: memref<1x128x128xbf16, #tpu.memory_space<vmem>>, %arg4: memref<1x128x128xbf16, #tpu.memory_space<vmem>>, %arg5: memref<64x128xf32, #tpu.memory_space<vmem>>, %arg6: memref<1x64x128xf32, #tpu.memory_space<vmem>>, %arg7: memref<1x64x256xf32, #tpu.memory_space<vmem>>, %arg8: memref<2x1x64x128xf32, #tpu.memory_space<vmem>>, %arg9: memref<2x1x64x1xf32, #tpu.memory_space<vmem>>, %arg10: memref<1x64x1xf32, #tpu.memory_space<vmem>>, %arg11: memref<1x64x1xf32, #tpu.memory_space<vmem>>, %arg12: memref<1x64x128xf32, #tpu.memory_space<vmem>>) attributes {dimension_semantics = [#tpu.dimension_semantics<parallel>, #tpu.dimension_semantics<arbitrary>], iteration_bounds = array<i64: 2, 2>, scalar_prefetch = 0 : i64, scratch_operands = 5 : i64, tpu.core_type = #tpu.core_type<tc>, window_params = [{transform_indices = @transform_0, window_bounds = array<i64: 1, 64, 128>}, {transform_indices = @transform_1, window_bounds = array<i64: 1, 128, 128>}, {transform_indices = @transform_2, window_bounds = array<i64: 1, 128, 128>}, {transform_indices = @transform_3, window_bounds = array<i64: 64, 128>}, {transform_indices = @transform_4, window_bounds = array<i64: 1, 64, 128>}, {transform_indices = @transform_5, window_bounds = array<i64: 1, 64, 256>}]} {
    %c0_i32 = arith.constant 0 : i32
    %0 = arith.cmpi eq, %arg1, %c0_i32 : i32
    %1 = arith.extui %0 : i1 to i32
    %c0_i32_0 = arith.constant 0 : i32
    %2 = arith.cmpi ne, %1, %c0_i32_0 : i32
    scf.if %2 {
      %cst_39 = arith.constant -1.000000e+30 : f32
      %44 = vector.broadcast %cst_39 : f32 to vector<1x64x1xf32>
      %c0_40 = arith.constant 0 : index
      %c0_41 = arith.constant 0 : index
      %c0_42 = arith.constant 0 : index
      %45 = vector.load %arg10[%c0_40, %c0_41, %c0_42] : memref<1x64x1xf32, #tpu.memory_space<vmem>>, vector<1x64x1xf32>
      tpu.vector_store %arg10[%c0_40, %c0_41, %c0_42], %44 {strides = array<i32>} : memref<1x64x1xf32, #tpu.memory_space<vmem>>, vector<1x64x1xf32>,
      %cst_43 = arith.constant 0.000000e+00 : f32
      %46 = vector.broadcast %cst_43 : f32 to vector<1x64x1xf32>
      %c0_44 = arith.constant 0 : index
      %c0_45 = arith.constant 0 : index
      %c0_46 = arith.constant 0 : index
      %47 = vector.load %arg11[%c0_44, %c0_45, %c0_46] : memref<1x64x1xf32, #tpu.memory_space<vmem>>, vector<1x64x1xf32>
      tpu.vector_store %arg11[%c0_44, %c0_45, %c0_46], %46 {strides = array<i32>} : memref<1x64x1xf32, #tpu.memory_space<vmem>>, vector<1x64x1xf32>,
      %cst_47 = arith.constant 0.000000e+00 : f32
      %48 = vector.broadcast %cst_47 : f32 to vector<1x64x128xf32>
      %c0_48 = arith.constant 0 : index
      %c0_49 = arith.constant 0 : index
      %c0_50 = arith.constant 0 : index
      %49 = vector.load %arg12[%c0_48, %c0_49, %c0_50] : memref<1x64x128xf32, #tpu.memory_space<vmem>>, vector<1x64x128xf32>
      tpu.vector_store %arg12[%c0_48, %c0_49, %c0_50], %48 {strides = array<i32>} : memref<1x64x128xf32, #tpu.memory_space<vmem>>, vector<1x64x128xf32>,
    } else {
    }
    %c0 = arith.constant 0 : index
    %c0_1 = arith.constant 0 : index
    %c0_2 = arith.constant 0 : index
    %3 = vector.load %arg2[%c0, %c0_1, %c0_2] : memref<1x64x128xbf16, #tpu.memory_space<vmem>>, vector<1x64x128xbf16>
    %c0_3 = arith.constant 0 : index
    %c0_4 = arith.constant 0 : index
    %c0_5 = arith.constant 0 : index
    %4 = vector.load %arg3[%c0_3, %c0_4, %c0_5] : memref<1x128x128xbf16, #tpu.memory_space<vmem>>, vector<1x128x128xbf16>
    "tpu.trace_start"() <{level = 10 : i32, message = "blc,bmc->blm"}> : () -> ()
    %cst = arith.constant dense<0.000000e+00> : vector<1x64x128xf32>
    %5 = tpu.matmul %3, %4, %cst {dimension_numbers = #tpu.dot_dimension_numbers<[2], [2], [1], [1], [0, 0, 0, 1, 1, 1], [0], [0]>} : vector<1x64x128xbf16>, vector<1x128x128xbf16>, vector<1x64x128xf32> -> vector<1x64x128xf32>
    "tpu.trace_stop"() : () -> ()
    %c0_6 = arith.constant 0 : index
    %c0_7 = arith.constant 0 : index
    %6 = vector.load %arg5[%c0_6, %c0_7] : memref<64x128xf32, #tpu.memory_space<vmem>>, vector<64x128xf32>
    %7 = vector.shape_cast %6 : vector<64x128xf32> to vector<1x64x128xf32>
    %8 = arith.addf %5, %7 : vector<1x64x128xf32>
    %c0_8 = arith.constant 0 : index
    %c0_9 = arith.constant 0 : index
    %c0_10 = arith.constant 0 : index
    %9 = vector.load %arg10[%c0_8, %c0_9, %c0_10] : memref<1x64x1xf32, #tpu.memory_space<vmem>>, vector<1x64x1xf32>
    %cst_11 = arith.constant dense<0xFF800000> : vector<1x64xf32>
    %10 = vector.multi_reduction <maximumf>, %8, %cst_11 [2] : vector<1x64x128xf32> to vector<1x64xf32>
    %11 = vector.shape_cast %10 : vector<1x64xf32> to vector<1x64x1xf32>
    %12 = arith.maximumf %9, %11 : vector<1x64x1xf32>
    %13 = arith.subf %9, %12 : vector<1x64x1xf32>
    %14 = math.exp %13 : vector<1x64x1xf32>
    %15 = vector.broadcast %12 : vector<1x64x1xf32> to vector<1x64x128xf32>
    %16 = arith.subf %8, %15 : vector<1x64x128xf32>
    %17 = math.exp %16 : vector<1x64x128xf32>
    %18 = arith.index_cast %arg1 : i32 to index
    %c0_12 = arith.constant 0 : index
    %c0_13 = arith.constant 0 : index
    %c0_14 = arith.constant 0 : index
    %19 = vector.load %arg8[%18, %c0_12, %c0_13, %c0_14] : memref<2x1x64x128xf32, #tpu.memory_space<vmem>>, vector<1x1x64x128xf32>
    %20 = vector.shape_cast %19 : vector<1x1x64x128xf32> to vector<1x64x128xf32>
    %21 = vector.shape_cast %17 : vector<1x64x128xf32> to vector<1x1x64x128xf32>
    tpu.vector_store %arg8[%18, %c0_12, %c0_13, %c0_14], %21 {strides = array<i32>} : memref<2x1x64x128xf32, #tpu.memory_space<vmem>>, vector<1x1x64x128xf32>,
    %22 = arith.index_cast %arg1 : i32 to index
    %c0_15 = arith.constant 0 : index
    %c0_16 = arith.constant 0 : index
    %c0_17 = arith.constant 0 : index
    %23 = vector.load %arg9[%22, %c0_15, %c0_16, %c0_17] : memref<2x1x64x1xf32, #tpu.memory_space<vmem>>, vector<1x1x64x1xf32>
    %24 = vector.shape_cast %23 : vector<1x1x64x1xf32> to vector<1x64x1xf32>
    %25 = vector.shape_cast %12 : vector<1x64x1xf32> to vector<1x1x64x1xf32>
    tpu.vector_store %arg9[%22, %c0_15, %c0_16, %c0_17], %25 {strides = array<i32>} : memref<2x1x64x1xf32, #tpu.memory_space<vmem>>, vector<1x1x64x1xf32>,
    %c0_18 = arith.constant 0 : index
    %c0_19 = arith.constant 0 : index
    %c0_20 = arith.constant 0 : index
    %26 = vector.load %arg11[%c0_18, %c0_19, %c0_20] : memref<1x64x1xf32, #tpu.memory_space<vmem>>, vector<1x64x1xf32>
    %27 = arith.mulf %14, %26 : vector<1x64x1xf32>
    %cst_21 = arith.constant dense<0.000000e+00> : vector<1x64xf32>
    %28 = vector.multi_reduction <add>, %17, %cst_21 [2] : vector<1x64x128xf32> to vector<1x64xf32>
    %29 = vector.shape_cast %28 : vector<1x64xf32> to vector<1x64x1xf32>
    %30 = arith.addf %27, %29 : vector<1x64x1xf32>
    %c0_22 = arith.constant 0 : index
    %c0_23 = arith.constant 0 : index
    %c0_24 = arith.constant 0 : index
    %31 = vector.load %arg11[%c0_22, %c0_23, %c0_24] : memref<1x64x1xf32, #tpu.memory_space<vmem>>, vector<1x64x1xf32>
    tpu.vector_store %arg11[%c0_22, %c0_23, %c0_24], %30 {strides = array<i32>} : memref<1x64x1xf32, #tpu.memory_space<vmem>>, vector<1x64x1xf32>,
    %c0_25 = arith.constant 0 : index
    %c0_26 = arith.constant 0 : index
    %c0_27 = arith.constant 0 : index
    %32 = vector.load %arg12[%c0_25, %c0_26, %c0_27] : memref<1x64x128xf32, #tpu.memory_space<vmem>>, vector<1x64x128xf32>
    %33 = vector.broadcast %14 : vector<1x64x1xf32> to vector<1x64x128xf32>
    %34 = arith.mulf %33, %32 : vector<1x64x128xf32>
    %35 = arith.truncf %17 : vector<1x64x128xf32> to vector<1x64x128xbf16>
    %c0_28 = arith.constant 0 : index
    %c0_29 = arith.constant 0 : index
    %c0_30 = arith.constant 0 : index
    %36 = vector.load %arg4[%c0_28, %c0_29, %c0_30] : memref<1x128x128xbf16, #tpu.memory_space<vmem>>, vector<1x128x128xbf16>
    "tpu.trace_start"() <{level = 10 : i32, message = "blm,bmc->blc"}> : () -> ()
    %cst_31 = arith.constant dense<0.000000e+00> : vector<1x64x128xf32>
    %37 = tpu.matmul %35, %36, %cst_31 {dimension_numbers = #tpu.dot_dimension_numbers<[2], [1], [1], [2], [0, 0, 0, 1, 1, 2], [0], [0]>} : vector<1x64x128xbf16>, vector<1x128x128xbf16>, vector<1x64x128xf32> -> vector<1x64x128xf32>
    "tpu.trace_stop"() : () -> ()
    %38 = arith.addf %34, %37 : vector<1x64x128xf32>
    %c0_32 = arith.constant 0 : index
    %c0_33 = arith.constant 0 : index
    %c0_34 = arith.constant 0 : index
    %39 = vector.load %arg12[%c0_32, %c0_33, %c0_34] : memref<1x64x128xf32, #tpu.memory_space<vmem>>, vector<1x64x128xf32>
    tpu.vector_store %arg12[%c0_32, %c0_33, %c0_34], %38 {strides = array<i32>} : memref<1x64x128xf32, #tpu.memory_space<vmem>>, vector<1x64x128xf32>,
    %c0_35 = arith.constant 0 : index
    %c0_36 = arith.constant 0 : index
    %c0_37 = arith.constant 0 : index
    %40 = vector.load %arg10[%c0_35, %c0_36, %c0_37] : memref<1x64x1xf32, #tpu.memory_space<vmem>>, vector<1x64x1xf32>
    tpu.vector_store %arg10[%c0_35, %c0_36, %c0_37], %12 {strides = array<i32>} : memref<1x64x1xf32, #tpu.memory_space<vmem>>, vector<1x64x1xf32>,
    %c1_i32 = arith.constant 1 : i32
    %41 = arith.cmpi eq, %arg1, %c1_i32 : i32
    %42 = arith.extui %41 : i1 to i32
    %c0_i32_38 = arith.constant 0 : i32
    %43 = arith.cmpi ne, %42, %c0_i32_38 : i32
    scf.if %43 {
      %c0_39 = arith.constant 0 : index
      %c0_40 = arith.constant 0 : index
      %c0_41 = arith.constant 0 : index
      %44 = vector.load %arg11[%c0_39, %c0_40, %c0_41] : memref<1x64x1xf32, #tpu.memory_space<vmem>>, vector<1x64x1xf32>
      %cst_42 = arith.constant 1.000000e+00 : f32
      %45 = vector.broadcast %cst_42 : f32 to vector<1x64x1xf32>
      %46 = arith.divf %45, %44 : vector<1x64x1xf32>
      %c0_43 = arith.constant 0 : index
      %c0_44 = arith.constant 0 : index
      %c0_45 = arith.constant 0 : index
      %47 = vector.load %arg10[%c0_43, %c0_44, %c0_45] : memref<1x64x1xf32, #tpu.memory_space<vmem>>, vector<1x64x1xf32>
      %c0_46 = arith.constant 0 : index
      %c0_47 = arith.constant 0 : index
      %c0_48 = arith.constant 0 : index
      %48 = vector.load %arg12[%c0_46, %c0_47, %c0_48] : memref<1x64x128xf32, #tpu.memory_space<vmem>>, vector<1x64x128xf32>
      %49 = vector.broadcast %46 : vector<1x64x1xf32> to vector<1x64x128xf32>
      %50 = arith.mulf %48, %49 : vector<1x64x128xf32>
      %c0_49 = arith.constant 0 : index
      %c0_50 = arith.constant 0 : index
      %c0_51 = arith.constant 0 : index
      %51 = vector.load %arg6[%c0_49, %c0_50, %c0_51] : memref<1x64x128xf32, #tpu.memory_space<vmem>>, vector<1x64x128xf32>
      tpu.vector_store %arg6[%c0_49, %c0_50, %c0_51], %50 {strides = array<i32>} : memref<1x64x128xf32, #tpu.memory_space<vmem>>, vector<1x64x128xf32>,
      %c0_52 = arith.constant 0 : index
      %c0_53 = arith.constant 0 : index
      %c0_54 = arith.constant 0 : index
      %c0_55 = arith.constant 0 : index
      %52 = vector.load %arg9[%c0_52, %c0_53, %c0_54, %c0_55] : memref<2x1x64x1xf32, #tpu.memory_space<vmem>>, vector<1x1x64x1xf32>
      %53 = vector.shape_cast %52 : vector<1x1x64x1xf32> to vector<1x64x1xf32>
      %54 = arith.subf %53, %47 : vector<1x64x1xf32>
      %55 = math.exp %54 : vector<1x64x1xf32>
      %56 = arith.mulf %55, %46 : vector<1x64x1xf32>
      %c0_56 = arith.constant 0 : index
      %c0_57 = arith.constant 0 : index
      %c0_58 = arith.constant 0 : index
      %c0_59 = arith.constant 0 : index
      %57 = vector.load %arg8[%c0_56, %c0_57, %c0_58, %c0_59] : memref<2x1x64x128xf32, #tpu.memory_space<vmem>>, vector<1x1x64x128xf32>
      %58 = vector.shape_cast %57 : vector<1x1x64x128xf32> to vector<1x64x128xf32>
      %59 = vector.broadcast %56 : vector<1x64x1xf32> to vector<1x64x128xf32>
      %60 = arith.mulf %58, %59 : vector<1x64x128xf32>
      %c0_60 = arith.constant 0 : index
      %c0_61 = arith.constant 0 : index
      %c0_62 = arith.constant 0 : index
      %61 = vector.load %arg7[%c0_60, %c0_61, %c0_62] : memref<1x64x256xf32, #tpu.memory_space<vmem>>, vector<1x64x128xf32>
      tpu.vector_store %arg7[%c0_60, %c0_61, %c0_62], %60 {strides = array<i32>} : memref<1x64x256xf32, #tpu.memory_space<vmem>>, vector<1x64x128xf32>,
      %c1 = arith.constant 1 : index
      %c0_63 = arith.constant 0 : index
      %c0_64 = arith.constant 0 : index
      %c0_65 = arith.constant 0 : index
      %62 = vector.load %arg9[%c1, %c0_63, %c0_64, %c0_65] : memref<2x1x64x1xf32, #tpu.memory_space<vmem>>, vector<1x1x64x1xf32>
      %63 = vector.shape_cast %62 : vector<1x1x64x1xf32> to vector<1x64x1xf32>
      %64 = arith.subf %63, %47 : vector<1x64x1xf32>
      %65 = math.exp %64 : vector<1x64x1xf32>
      %66 = arith.mulf %65, %46 : vector<1x64x1xf32>
      %c1_66 = arith.constant 1 : index
      %c0_67 = arith.constant 0 : index
      %c0_68 = arith.constant 0 : index
      %c0_69 = arith.constant 0 : index
      %67 = vector.load %arg8[%c1_66, %c0_67, %c0_68, %c0_69] : memref<2x1x64x128xf32, #tpu.memory_space<vmem>>, vector<1x1x64x128xf32>
      %68 = vector.shape_cast %67 : vector<1x1x64x128xf32> to vector<1x64x128xf32>
      %69 = vector.broadcast %66 : vector<1x64x1xf32> to vector<1x64x128xf32>
      %70 = arith.mulf %68, %69 : vector<1x64x128xf32>
      %c0_70 = arith.constant 0 : index
      %c0_71 = arith.constant 0 : index
      %c128 = arith.constant 128 : index
      %71 = vector.load %arg7[%c0_70, %c0_71, %c128] : memref<1x64x256xf32, #tpu.memory_space<vmem>>, vector<1x64x128xf32>
      tpu.vector_store %arg7[%c0_70, %c0_71, %c128], %70 {strides = array<i32>} : memref<1x64x256xf32, #tpu.memory_space<vmem>>, vector<1x64x128xf32>,
    } else {
    }
    return
  }
  func.func @transform_0(%arg0: i32, %arg1: i32) -> (i32, i32, i32) {
    %c0_i32 = arith.constant 0 : i32
    %c0_i32_0 = arith.constant 0 : i32
    %c0_i32_1 = arith.constant 0 : i32
    return %arg0, %c0_i32, %c0_i32_0 : i32, i32, i32
  }
  func.func @transform_1(%arg0: i32, %arg1: i32) -> (i32, i32, i32) {
    %c0_i32 = arith.constant 0 : i32
    %c0_i32_0 = arith.constant 0 : i32
    return %arg0, %arg1, %c0_i32 : i32, i32, i32
  }
  func.func @transform_2(%arg0: i32, %arg1: i32) -> (i32, i32, i32) {
    %c0_i32 = arith.constant 0 : i32
    %c0_i32_0 = arith.constant 0 : i32
    return %arg0, %arg1, %c0_i32 : i32, i32, i32
  }
  func.func @transform_3(%arg0: i32, %arg1: i32) -> (i32, i32) {
    %c0_i32 = arith.constant 0 : i32
    %c0_i32_0 = arith.constant 0 : i32
    return %c0_i32, %arg1 : i32, i32
  }
  func.func @transform_4(%arg0: i32, %arg1: i32) -> (i32, i32, i32) {
    %c0_i32 = arith.constant 0 : i32
    %c0_i32_0 = arith.constant 0 : i32
    %c0_i32_1 = arith.constant 0 : i32
    return %arg0, %c0_i32, %c0_i32_0 : i32, i32, i32
  }
  func.func @transform_5(%arg0: i32, %arg1: i32) -> (i32, i32, i32) {
    %c0_i32 = arith.constant 0 : i32
    %c0_i32_0 = arith.constant 0 : i32
    %c0_i32_1 = arith.constant 0 : i32
    return %arg0, %c0_i32, %c0_i32_0 : i32, i32, i32
  }
}

</mosaic_0001>

<bundles_post_ra>
// kernel: tpu_custom_call.1
= control target key start
LH: loop header
LB: loop body
LE: loop exit
PB: predicated region body
PF: predicated region fallthrough
CT: control target
= control target key end

     0   :  { %s3153_s0 = inlined_call_operand.hbm [shape: bf16[2,64,128], index: 0, kind: input, shape index: {}]   ;;  %s3154_s1 = inlined_call_operand.hbm [shape: bf16[2,256,128], index: 1, kind: input, shape index: {}]   ;;  %s3155_s2 = inlined_call_operand.hbm [shape: bf16[2,256,128], index: 2, kind: input, shape index: {}]   ;;  %s3156_s3 = inlined_call_operand.hbm [shape: f32[64,256], index: 3, kind: input, shape index: {}]   ;;  %s3157_s4 = inlined_call_operand.hbm [shape: f32[2,64,128], index: 4, kind: output, shape index: {0}]   ;;  %s3158_s5 = inlined_call_operand.hbm [shape: f32[2,64,256], index: 5, kind: output, shape index: {1}]  }
   0x1   :  { %3178 = sst [smem:[#allocation34_spill]] %s3153_s0 }
   0x2   :  { %3179 = sst [smem:[#allocation35_spill]] %s3154_s1 }
   0x3   :  { %3180 = sst [smem:[#allocation36_spill]] %s3155_s2 }
   0x4   :  { %3181 = sst [smem:[#allocation37_spill]] %s3156_s3 }
   0x5   :  { %3182 = sst [smem:[#allocation38_spill]] %s3157_s4 }
   0x6   :  { %3183 = sst [smem:[#allocation39_spill]] %s3158_s5 }
   0x7   :  { %11 = vsyncpa [#allocation8], 0 }
   0x8   :  { %13 = vsyncpa [#allocation8 + $0x1], 0 }
   0x9   :  { %14 = vsyncpa [#allocation11], 0 }
   0xa   :  { %16 = vsyncpa [#allocation11 + $0x1], 0 }
   0xb   :  { %17 = vsyncpa [#allocation14], 0 }
   0xc   :  { %19 = vsyncpa [#allocation14 + $0x1], 0 }
   0xd   :  { %20 = vsyncpa [#allocation9], 0 }
   0xe   :  { %22 = vsyncpa [#allocation9 + $0x1], 0 }
   0xf   :  { %23 = vsyncpa [#allocation17], 0 }
  0x10   :  { %25 = vsyncpa [#allocation17 + $0x1], 0  ;;  %s2350_s18 = smov 0   ;;  %s2352_s19 = smov 0  }
  0x11   :  { %s2354_s20 = smov 0   ;;  %s2356_s21 = smov 0  }
  0x12   :  { %s2358_s22 = smov 0   ;;  %s2360_s23 = smov 0  }
  0x13   :  { %s2362_s24 = smov 0   ;;  %s2364_s25 = smov 0  }
  0x14   :  { %s2366_s26 = smov 0   ;;  %s2368_s27 = smov 0  }
  0x15   :  { %s2370_s28 = smov 0   ;;  %s2372_s29 = smov 0  }
  0x16   :  { %s2374_s30 = smov 0   ;;  %s2376_s6 = smov 0  }
  0x17 LB: > { %3184 = sst [smem:[#allocation23_spill]] %s2269_s22  ;;  %s2419_s7 = sadd.s32 4294967295, %s2305_s6   ;;  %s2305_s6 = sphi %s2376_s6, %s31_s6   ;;  %s2301_s30 = sphi %s2374_s30, %s3259_s30   ;;  %s2297_s29 = sphi %s2372_s29, %s3266_s29   ;;  %s2293_s28 = sphi %s2370_s28, %s3257_s28   ;;  %s2289_s27 = sphi %s2368_s27, %s3265_s27   ;;  %s2285_s26 = sphi %s2366_s26, %s3256_s26   ;;  %s2281_s25 = sphi %s2364_s25, %s3264_s25   ;;  %s2277_s24 = sphi %s2362_s24, %s3263_s24   ;;  %s2273_s23 = sphi %s2360_s23, %s3254_s23   ;;  %s2269_s22 = sphi %s2358_s22, %s3253_s22   ;;  %s2265_s21 = sphi %s2356_s21, %s3252_s21   ;;  %s2261_s20 = sphi %s2354_s20, %s3262_s20   ;;  %s2257_s19 = sphi %s2352_s19, %s3261_s19   ;;  %s2253_s18 = sphi %s2350_s18, %s3260_s18  }
  0x18   : > { %3185 = sst [smem:[#allocation24_spill]] %s2273_s23  ;;  %s40_s8 = sadd.s32 1, %s2297_s29 }
  0x19   : > { %3186 = sst [smem:[#allocation25_spill]] %s2285_s26  ;;  %p41_p0 = scmp.ge.s32.totalorder %s40_s8, 2 }
  0x1a   : > { %3187 = sst [smem:[#allocation26_spill]] %s2289_s27  ;;  %s43_s9 = sadd.s32 1, %s2301_s30 }
  0x1b   : > { %3188 = sst [smem:[#allocation27_spill]] %s2293_s28  ;;  %p3168_p1 = scmp.eq.s32.totalorder %s2305_s6, 0 }
  0x1c   : > { %3189 = sst [smem:[#allocation28_spill]] %s2301_s30  ;;  %p3176_p2 = scmp.eq.s32.totalorder %s2419_s7, 0 }
  0x1d   : > { %s3268_s8 = smov (%p41_p0, %s40_s8), 0  ;;  %s3270_s9 = smov (!%p41_p0, %s43_s9), %s2301_s30 }
  0x1e   : > { %3190 = sst [smem:[#allocation29_spill]] %s3268_s8  ;;  %s2430_s10 = ssub.s32 %s2297_s29, %s3268_s8 }
  0x1f   : > { %s78_s11 = sadd.s32 1, %s2273_s23  ;;  %p45_p3 = scmp.ge.s32.totalorder %s3270_s9, 2 }
  0x20   : > { %p85_p4 = scmp.ne.s32.totalorder %s2273_s23, %s2269_s22  ;;  %p91_p5 = scmp.ne.s32.totalorder %s2269_s22, %s2265_s21 }
  0x21   : > { %p130_p6 = scmp.eq.s32.totalorder %s2430_s10, 0  ;;  %s3272_s9 = smov (%p45_p3, %s3270_s9), 0 }
  0x22   : > { %3191 = sst [smem:[#allocation30_spill]] %s3272_s9  ;;  %p2441_p7 = por %p85_p4, %p3168_p1 }
  0x23   : > { %p2447_p8 = por %p91_p5, %p3176_p2  ;;  %s2453_s14 = ssub.s32 %s2301_s30, %s3272_s9 }
  0x24   : > { %p48_p9 = scmp.eq.s32.totalorder %s2453_s14, 0  ;;  %s75_s15 = sor.u32 %s2430_s10, %s2453_s14 }
  0x25   : > { %s3193_s13 = scalar_select %p2447_p8, 1, 0 }
  0x26   : > { %p76_p10 = scmp.eq.s32.totalorder %s75_s15, 0  ;;  %p3177_p11 = scmp.lt.s32.totalorder %s2305_s6, 4 }
  0x27   : > { %3194 = sst [smem:[#allocation31_spill]] %s3193_s13  ;;  %s1715_s16 = sshll.u32 %s2301_s30, 5 }
  0x28   : > { %s2461_s17 = scalar_select %p76_p10, %s2273_s23, %s78_s11  }
  0x29   : > { %s243_s21 = sand.u32 1, %s2305_s6   ;;  %s245_s8 = sand.u32 1, %s2273_s23  }
  0x2a   : > { %3195 = sst [smem:[#allocation32_spill]] %s2461_s17  ;;  %s1607_s5 = sshll.u32 %s245_s8, 6 }
  0x2b   : > { %s1608_s4 = sshll.u32 %s2297_s29, 4  ;;  %s247_s9 = scalar_lea.vmem [#allocation10], %s1607_s5 }
  0x2c   : > { %s252_s28 = sadd.s32 %s1715_s16, %s1608_s4  ;;  %s257_s13 = sshll.u32 %s247_s9, 4  ;;  %s258_s13 = int_to_ptr.vmem [resolvable:$true] %s257_s13 }
  0x2d   : > { %s1610_s27 = sshll.u32 %s252_s28, 2  ;;  %s3196_s1 = sld [smem:[#allocation35_spill]] }
  0x2e   : > { %p2475_p12 = pnand %p3177_p11, %p2441_p7  ;;  %s3198_s2 = sld [smem:[#allocation36_spill]] }
  0x2f   : > { %s2482_s22 = scalar_lea.sflag [#allocation11], %s243_s21  ;;  %s3171_s8 = smov 4  }
  0x30   : > { %s271_s12 = scalar_lea.vmem [#allocation12], %s1607_s5  ;;  %p1617_p13 = scmp.ge.s32.totalorder %s2305_s6, 1 }
  0x31   : > { %p310_p0 = scmp.lt.s32.totalorder %s2305_s6, 5  ;;  %s1601_s4 = sadd.s32 4294967294, %s2305_s6  }
  0x32   : > { %s50_s28 = sadd.s32 1, %s2285_s26  ;;  %p57_p4 = scmp.ne.s32.totalorder %s2285_s26, %s2281_s25 }
  0x33   : > { %s254_s0 = scalar_lea.hbm %s3196_s1, %s1610_s27  ;;  %p2497_p3 = pnand %p1617_p13, %p310_p0 }
  0x34   : > { %s255_s15 = sshll.u32 %s254_s0, 4  ;;  %s278_s3 = scalar_lea.hbm %s3198_s2, %s1610_s27  ;;  %s256_s15 = int_to_ptr.hbm [resolvable:$true] %s255_s15 }
  0x35   : > { %s3169_s0 = smov 64   ;;  %s279_s9 = sshll.u32 %s278_s3, 4  ;;  %s2492_s9 = int_to_ptr.hbm [resolvable:$true] %s279_s9 }
  0x36   : > { %1772 = dma.hbm_to_vmem [thread:$0]  (!%p2475_p12), %s256_s15, 1024, %s258_s13, %s2482_s22, %s3169_s0, %s3169_s0, %s3171_s8  }
  0x37   : > { %s2490_s27 = sshll.u32 %s271_s12, 4  ;;  %p2512_p5 = por %p3168_p1, %p57_p4  ;;  %s282_s27 = int_to_ptr.vmem [resolvable:$true] %s2490_s27 }
  0x38   : > { %s2508_s13 = scalar_select %p48_p9, %s2285_s26, %s50_s28  }
  0x39   : > { %p63_p7 = scmp.ne.s32.totalorder %s2281_s25, %s2277_s24  ;;  %p169_p10 = scmp.eq.s32.totalorder %s2419_s7, 3 }
  0x3a   : > { %3200 = sst [smem:[#allocation33_spill]] %s2508_s13  ;;  %p175_p13 = scmp.eq.s32.totalorder %s1601_s4, 3 }
  0x3b   : > { %p2521_p0 = por %p3176_p2, %p63_p7  ;;  %s221_s14 = sand.u32 1, %s2285_s26  }
  0x3c   : > { %p2526_p9 = por %p169_p10, %p57_p4  ;;  %p2530_p1 = por %p175_p13, %p63_p7 }
  0x3d   : > { %s1604_s4 = sshll.u32 %s221_s14, 5  ;;  %s3205_s8 = sld [smem:[#allocation34_spill]] }
  0x3e   : > { %s225_s13 = scalar_lea.vmem [#allocation7], %s1604_s4  ;;  %p1767_p4 = pnand %p3177_p11, %p2512_p5 }
  0x3f   : > { %s233_s26 = sshll.u32 %s225_s13, 4  ;;  %s3206_s17 = smov 4   ;;  %s234_s26 = int_to_ptr.vmem [resolvable:$true] %s233_s26 }
  0x40   : > { %s3207_s23 = smov 64   ;;  %s222_s30 = scalar_lea.sflag [#allocation8], %s221_s14 }
  0x41   : > { %1775 = dma.hbm_to_vmem [thread:$0]  (!%p2475_p12), %s2492_s9, 1024, %s282_s27, %s2482_s22, %s3207_s23, %s3207_s23, %s3206_s17  }
  0x42   : > { %p139_p7 = scmp.ne.s32.totalorder %s2261_s20, %s2257_s19  ;;  %p3208_p10 = scmp.eq.s32.totalorder %s2305_s6, 0 }
  0x43   : > { %s230_s1 = scalar_lea.hbm %s3205_s8, %s1715_s16  ;;  %p145_p2 = scmp.ne.s32.totalorder %s2257_s19, %s2253_s18 }
  0x44   : > { %s231_s2 = sshll.u32 %s230_s1, 4  ;;  %s132_s1 = sadd.s32 1, %s2261_s20  ;;  %s232_s2 = int_to_ptr.hbm [resolvable:$true] %s231_s2 }
  0x45   : > { %1769 = dma.hbm_to_vmem [thread:$0]  (!%p1767_p4), %s232_s2, 512, %s234_s26, %s222_s30, %s3207_s23, %s3207_s23, %s3206_s17  }
  0x46   : > { %s2559_s16 = scalar_select %p130_p6, %s2261_s20, %s132_s1  }
  0x47   : > { %p141_p13 = por %p139_p7, %p3208_p10  ;;  %s291_s0 = sand.u32 1, %s2261_s20  }
  0x48   : > { %s1616_s11 = sshll.u32 %s2297_s29, 3  ;;  %p3209_p5 = scmp.eq.s32.totalorder %s2419_s7, 0 }
  0x49   : > { %s1615_s22 = sshll.u32 %s291_s0, 6  ;;  %s3211_s2 = sld [smem:[#allocation37_spill]] }
  0x4a   : > { %p2569_p11 = por %p145_p2, %p3209_p5  ;;  %s295_s30 = scalar_lea.vmem [#allocation13], %s1615_s22 }
  0x4b   : > { %s302_s10 = sshll.u32 %s295_s30, 4  ;;  %p3212_p6 = scmp.lt.s32.totalorder %s2305_s6, 4  ;;  %s303_s10 = int_to_ptr.vmem [resolvable:$true] %s302_s10 }
  0x4c   : > { %s292_s18 = scalar_lea.sflag [#allocation14], %s291_s0  ;;  %s2309_s17 = smov 256  }
  0x4d   : > { %p1776_p12 = pnand %p3212_p6, %p141_p13  ;;  %s2310_s13 = smov 128  }
  0x4e   : > { %s2311_s5 = smov 8   ;;  %314 = sbr.rel (%p2497_p3) target bundleno = 1011 (0x3f3), region = 36 }
  0x4f   : > { %s299_s23 = scalar_lea.hbm %s3211_s2, %s1616_s11  ;;  %s2581_s14 = sand.u32 (!%p2497_p3), 1, %s2281_s25  }
  0x50   : > { %s300_s26 = sshll.u32 %s299_s23, 4  ;;  %s1618_s4 = sshll.u32 (!%p2497_p3), %s2581_s14, 5  ;;  %s301_s26 = int_to_ptr.hbm [resolvable:$true] %s300_s26 }
  0x51   : > { %1778 = dma.hbm_to_vmem [thread:$0]  (!%p1776_p12), %s301_s26, 1024, %s303_s10, %s292_s18, %s2309_s17, %s2310_s13, %s2311_s5  }
  0x52   : > { %s317_s28 = scalar_lea.sflag (!%p2497_p3), [#allocation8], %s2581_s14  ;;  %s2585_s1 = scalar_lea.vmem (!%p2497_p3), [#allocation7], %s1618_s4 }
  0x53   : > { %2232 = dma.done.wait (%p2521_p0), %s317_s28, 512  }
  0x54   : > { %2234 = vsyncadd (%p2521_p0), %s317_s28, 4294966784  ;;  %s3213_s0 = sld [smem:[#allocation23_spill]]  ;;  %s326_s21 = sand.u32 1, %s2419_s7  }
  0x55   : > { %s327_s27 = scalar_lea.sflag [#allocation11], %s326_s21 }
  0x5a   : > { %s328_s22 = sand.u32 1, %s3213_s0  }
  0x5b   : > { %s1619_s9 = sshll.u32 %s328_s22, 6 }
  0x5c   : > { %s2593_s2 = scalar_lea.vmem [#allocation10], %s1619_s9 }
  0x5d   : > { %2236 = dma.done.wait (%p2447_p8), %s327_s27, 2048  }
  0x5e   : > { %2238 = vsyncadd (%p2447_p8), %s327_s27, 4294965248  ;;  %s346_s23 = sand.u32 1, %s2257_s19   ;;  %s2600_s15 = scalar_lea.vmem [#allocation12], %s1619_s9 }
  0x5f   : > { %s1621_s26 = sshll.u32 %s346_s23, 6  ;;  %s347_s30 = scalar_lea.sflag [#allocation14], %s346_s23 }
  0x60   : > { %s2602_s10 = scalar_lea.vmem [#allocation13], %s1621_s26 }
  0x61   : > { %2240 = dma.done.wait (%p2569_p11), %s347_s30, 1024  }
  0x62   : > { %2242 = vsyncadd (%p2569_p11), %s347_s30, 4294966272  ;;  %s1622_s7 = sshll.u32 %s2581_s14, 6  ;;  %s1623_s18 = sshll.u32 %s2581_s14, 7 }
  0x63   : > { %s2610_s17 = scalar_lea.vmem [#allocation15], %s1622_s7  ;;  %s2612_s13 = scalar_lea.vmem [#allocation16], %s1623_s18 }
  0x64   : > { %s3215_s5 = sld [smem:[#allocation26_spill]] }
  0x6a   : > { %p1624_p2 = scmp.ne.s32.totalorder %s3215_s5, 0 }
  0x6c   : > { %403 = sbr.rel (%p1624_p2) target bundleno = 138 (0x8a), region = 56 }
  0x71   : > { %vm404_vm0 = vcmask 7168   ;;  %v2312_v0 = vmov -1e+30   ;;  %v2313_v1 = vmov 0.0  }
  0x72   : > { %405 = vst.msk [vmem:[#allocation4] sm:$0xff] %vm404_vm0, %v2312_v0 }
  0x73   : > { %406 = vst.msk [vmem:[#allocation4 + $0x8] sm:$0xff] %vm404_vm0, %v2312_v0 }
  0x74   : > { %407 = vst.msk [vmem:[#allocation4 + $0x10] sm:$0xff] %vm404_vm0, %v2312_v0 }
  0x75   : > { %408 = vst.msk [vmem:[#allocation4 + $0x18] sm:$0xff] %vm404_vm0, %v2312_v0 }
  0x76   : > { %409 = vst.msk [vmem:[#allocation4 + $0x20] sm:$0xff] %vm404_vm0, %v2312_v0 }
  0x77   : > { %410 = vst.msk [vmem:[#allocation4 + $0x28] sm:$0xff] %vm404_vm0, %v2312_v0 }
  0x78   : > { %411 = vst.msk [vmem:[#allocation4 + $0x30] sm:$0xff] %vm404_vm0, %v2312_v0 }
  0x79   : > { %412 = vst.msk [vmem:[#allocation4 + $0x38] sm:$0xff] %vm404_vm0, %v2312_v0 }
  0x7a   : > { %413 = vst.msk [vmem:[#allocation5] sm:$0xff] %vm404_vm0, %v2313_v1 }
  0x7b   : > { %414 = vst.msk [vmem:[#allocation5 + $0x8] sm:$0xff] %vm404_vm0, %v2313_v1 }
  0x7c   : > { %415 = vst.msk [vmem:[#allocation5 + $0x10] sm:$0xff] %vm404_vm0, %v2313_v1 }
  0x7d   : > { %416 = vst.msk [vmem:[#allocation5 + $0x18] sm:$0xff] %vm404_vm0, %v2313_v1 }
  0x7e   : > { %417 = vst.msk [vmem:[#allocation5 + $0x20] sm:$0xff] %vm404_vm0, %v2313_v1 }
  0x7f   : > { %418 = vst.msk [vmem:[#allocation5 + $0x28] sm:$0xff] %vm404_vm0, %v2313_v1 }
  0x80   : > { %419 = vst.msk [vmem:[#allocation5 + $0x30] sm:$0xff] %vm404_vm0, %v2313_v1 }
  0x81   : > { %420 = vst.msk [vmem:[#allocation5 + $0x38] sm:$0xff] %vm404_vm0, %v2313_v1 }
  0x82   : > { %421 = vst [vmem:[#allocation6 + $0x30] sm:$0xff] %v2313_v1 }
  0x83   : > { %422 = vst [vmem:[#allocation6] sm:$0xff] %v2313_v1 }
  0x84   : > { %423 = vst [vmem:[#allocation6 + $0x18] sm:$0xff] %v2313_v1 }
  0x85   : > { %424 = vst [vmem:[#allocation6 + $0x10] sm:$0xff] %v2313_v1 }
  0x86   : > { %425 = vst [vmem:[#allocation6 + $0x8] sm:$0xff] %v2313_v1 }
  0x87   : > { %426 = vst [vmem:[#allocation6 + $0x20] sm:$0xff] %v2313_v1 }
  0x88   : > { %427 = vst [vmem:[#allocation6 + $0x28] sm:$0xff] %v2313_v1 }
  0x89   : > { %428 = vst [vmem:[#allocation6 + $0x38] sm:$0xff] %v2313_v1 }
  0x8a PF: > { %v1727_v2 = vld [vmem:[%s2593_s2 + $0x38] sm:$0xff]  ;;  %v1726_v3 = vld [vmem:[%s2593_s2 + $0x30] sm:$0xff]  ;;  %v1725_v4 = vld [vmem:[%s2593_s2 + $0x28] sm:$0xff]  ;;  %s3216_s8 = sld [smem:[#allocation26_spill]]  ;;  %v2314_v38 = vmov 0   ;;  %vm693_vm1 = vcmask 7168  }
  0x8b   : > { %533 = vmatpush.bf16.xpose.msra.mxu0 %v1727_v2  ;;  %1738 = vmatpush.bf16.xpose.msra.mxu2 %v1727_v2  ;;  %v1724_v5 = vld [vmem:[%s2593_s2 + $0x20] sm:$0xff]  ;;  %v1723_v6 = vld [vmem:[%s2593_s2 + $0x18] sm:$0xff]  ;;  %v1722_v7 = vld [vmem:[%s2593_s2 + $0x10] sm:$0xff] }
  0x8c   : > { %1739 = vmatpush.bf16.xpose.msra.mxu3 %v1727_v2  ;;  %v1721_v8 = vld [vmem:[%s2593_s2 + $0x8] sm:$0xff]  ;;  %v1720_v9 = vld [vmem:[%s2593_s2] sm:$0xff]  ;;  %v1718_v12 = vld [vmem:[%s2585_s1 + $0x10] sm:$0xff]  ;;  %1913 = vset.pattern.permute.xlu0 %v2314_v38 }
  0x8d   : > { %v1716_v10 = vld [vmem:[%s2585_s1] sm:$0xff]  ;;  %v1717_v11 = vld [vmem:[%s2585_s1 + $0x8] sm:$0xff]  ;;  %v1719_v13 = vld [vmem:[%s2585_s1 + $0x18] sm:$0xff]  ;;  %1915 = vset.pattern.permute.xlu2 %v2314_v38  ;;  %1914 = vset.pattern.permute.xlu1 %v2314_v38 }
  0x8e   : > { %v453_v14 = vld [vmem:[%s2602_s10] sm:$0xff]  ;;  %v455_v17 = vld [vmem:[%s2602_s10 + $0x10] sm:$0xff]  ;;  %v454_v20 = vld [vmem:[%s2602_s10 + $0x8] sm:$0xff] }
  0x8f   : > { %v457_v18 = vld [vmem:[%s2602_s10 + $0x20] sm:$0xff]  ;;  %v456_v26 = vld [vmem:[%s2602_s10 + $0x18] sm:$0xff]  ;;  %v458_v27 = vld [vmem:[%s2602_s10 + $0x28] sm:$0xff] }
  0x90   : > { %v459_v32 = vld [vmem:[%s2602_s10 + $0x30] sm:$0xff]  ;;  %v460_v35 = vld [vmem:[%s2602_s10 + $0x38] sm:$0xff]  ;;  %s1673_s4 = sshll.u32 %s3216_s8, 6  ;;  %v562_v39 = vld [vmem:[#allocation4] sm:$0xff]  ;;  %p1706_p8 = scmp.ne.s32.totalorder %s3216_s8, 1 }
  0x91   : > { %s2678_s28 = scalar_lea.vmem [#allocation3], %s1673_s4  ;;  %v564_v42 = vld [vmem:[#allocation4 + $0x10] sm:$0xff]  ;;  %v566_v43 = vld [vmem:[#allocation4 + $0x20] sm:$0xff]  ;;  %v563_v45 = vld [vmem:[#allocation4 + $0x8] sm:$0xff]  ;;  %s2746_s1 = scalar_lea.vmem [#allocation2], %s1673_s4 }
  0x92   : > { %v565_v52 = vld [vmem:[#allocation4 + $0x18] sm:$0xff]  ;;  %v567_v53 = vld [vmem:[#allocation4 + $0x28] sm:$0xff]  ;;  %v568_v61 = vld [vmem:[#allocation4 + $0x30] sm:$0xff] }
  0x93   : > { %534 = vmatpush.bf16.xpose.msra.mxu0 %v1726_v3  ;;  %1740 = vmatpush.bf16.xpose.msra.mxu2 %v1726_v3  ;;  %v1729_v38 = vld [vmem:[%s2600_s15 + $0x8] sm:$0xff] }
  0x94   : > { %1741 = vmatpush.bf16.xpose.msra.mxu3 %v1726_v3 }
  0x9b   : > { %535 = vmatpush.bf16.xpose.msra.mxu0 %v1725_v4  ;;  %1742 = vmatpush.bf16.xpose.msra.mxu2 %v1725_v4 }
  0x9c   : > { %1743 = vmatpush.bf16.xpose.msra.mxu3 %v1725_v4 }
  0xa3   : > { %536 = vmatpush.bf16.xpose.msra.mxu0 %v1724_v5  ;;  %1744 = vmatpush.bf16.xpose.msra.mxu2 %v1724_v5 }
  0xa4   : > { %1745 = vmatpush.bf16.xpose.msra.mxu3 %v1724_v5 }
  0xab   : > { %537 = vmatpush.bf16.xpose.msra.mxu0 %v1723_v6  ;;  %1746 = vmatpush.bf16.xpose.msra.mxu2 %v1723_v6 }
  0xac   : > { %1747 = vmatpush.bf16.xpose.msra.mxu3 %v1723_v6 }
  0xb3   : > { %538 = vmatpush.bf16.xpose.msra.mxu0 %v1722_v7  ;;  %1748 = vmatpush.bf16.xpose.msra.mxu2 %v1722_v7 }
  0xb4   : > { %1749 = vmatpush.bf16.xpose.msra.mxu3 %v1722_v7 }
  0xbb   : > { %539 = vmatpush.bf16.xpose.msra.mxu0 %v1721_v8  ;;  %1750 = vmatpush.bf16.xpose.msra.mxu2 %v1721_v8 }
  0xbc   : > { %1751 = vmatpush.bf16.xpose.msra.mxu3 %v1721_v8  ;;  %v2704_v8 = vld [vmem:[#allocation4 + $0x38] sm:$0xff] }
  0xc3   : > { %540 = vmatpush.bf16.xpose.msra.mxu0 %v1720_v9  ;;  %1752 = vmatpush.bf16.xpose.msra.mxu2 %v1720_v9 }
  0xc4   : > { %1753 = vmatpush.bf16.xpose.msra.mxu3 %v1720_v9 }
  0xca   : > { %541 = vmatmul.bf16.vlgmr.msra.gmra.mxu0 %v1716_v10  ;;  %546 = vmatmul.bf16.vlgmr.msra.gmra.mxu2 %v1717_v11 }
  0xcb   : > { %551 = vmatmul.bf16.vlgmr.msra.gmra.mxu3 %v1718_v12 }
  0xdb   : > { %556 = vmatmul.bf16.gmra.mxu3 %v1719_v13 }
 0x147   : > { %v542_v15 = vpop.f32.mrf.mxu0 }
 0x148   : > { %v2644_v16 = vadd.f32 %v542_v15, %v453_v14 }
 0x14a   : > { %570 = vmax.xlane.f32.xlu0 %v2644_v16 }
 0x14d   : > { %v547_v19 = vpop.f32.mrf.mxu2 }
 0x14e   : > { %v2650_v21 = vadd.f32 %v547_v19, %v455_v17  ;;  %v552_v22 = vpop.f32.mrf.mxu3 }
 0x14f   : > { %v2652_v23 = vadd.f32 %v552_v22, %v457_v18  ;;  %v544_v24 = vpop.f32.mrf.mxu0 }
 0x150   : > { %v2654_v25 = vadd.f32 %v544_v24, %v454_v20  ;;  %574 = vmax.xlane.f32.xlu1 %v2650_v21  ;;  %v1735_v24 = vld [vmem:[%s2600_s15 + $0x38] sm:$0xff] }
 0x151   : > { %578 = vmax.xlane.f32.xlu2 %v2652_v23  ;;  %902 = vmatpush.bf16.msra.mxu1 %v1735_v24 }
 0x152   : > { %572 = vmax.xlane.f32.xlu0 %v2654_v25 }
 0x155   : > { %v549_v28 = vpop.f32.mrf.mxu2 }
 0x156   : > { %v554_v29 = vpop.f32.mrf.mxu3  ;;  %v2661_v30 = vadd.f32 %v549_v28, %v456_v26  ;;  %v1734_v26 = vld [vmem:[%s2600_s15 + $0x30] sm:$0xff]  ;;  %v1732_v28 = vld [vmem:[%s2600_s15 + $0x20] sm:$0xff] }
 0x157   : > { %v2663_v31 = vadd.f32 %v554_v29, %v458_v27  ;;  %903 = vmatpush.bf16.msra.mxu1 %v1734_v26  ;;  %v1733_v27 = vld [vmem:[%s2600_s15 + $0x28] sm:$0xff]  ;;  %v1731_v29 = vld [vmem:[%s2600_s15 + $0x18] sm:$0xff] }
 0x158   : > { %576 = vmax.xlane.f32.xlu1 %v2661_v30 }
 0x159   : > { %580 = vmax.xlane.f32.xlu2 %v2663_v31 }
 0x15b   : > { %904 = vmatpush.bf16.msra.mxu1 %v1733_v27 }
 0x15e   : > { %v557_v33 = vpop.f32.mrf.mxu3 }
 0x15f   : > { %v2668_v34 = vadd.f32 %v557_v33, %v459_v32  ;;  %905 = vmatpush.bf16.msra.mxu1 %v1732_v28 }
 0x161   : > { %582 = vmax.xlane.f32.xlu2 %v2668_v34 }
 0x163   : > { %906 = vmatpush.bf16.msra.mxu1 %v1731_v29 }
 0x166   : > { %v559_v36 = vpop.f32.mrf.mxu3 }
 0x167   : > { %v2672_v37 = vadd.f32 %v559_v36, %v460_v35  ;;  %v1730_v35 = vld [vmem:[%s2600_s15 + $0x10] sm:$0xff] }
 0x168   : > { %907 = vmatpush.bf16.msra.mxu1 %v1730_v35 }
 0x169   : > { %584 = vmax.xlane.f32.xlu2 %v2672_v37 }
 0x16c   : > { %908 = vmatpush.bf16.msra.mxu1 %v1729_v38 }
 0x1bd   : > { %v571_v40 = vpop.xlane.xlu0 %570 }
 0x1be   : > { %v586_v41 = vmax.f32 %v562_v39, %v571_v40 }
 0x1c0   : > { %694 = vst.msk [vmem:[%s2678_s28] sm:$0xff] %vm693_vm1, %v586_v41  ;;  %620 = vperm.xlu0 %1913, %v586_v41   ;;  %v594_v59 = vsub.f32 %v562_v39, %v586_v41  ;;  %v1728_v39 = vld [vmem:[%s2600_s15] sm:$0xff] }
 0x1c1   : > { %947 = vst.msk [vmem:[#allocation4] sm:$0xff] %vm693_vm1, %v586_v41  ;;  %909 = vmatpush.bf16.msra.mxu1 %v1728_v39 }
 0x1c2   : > { %v602_v62 = vmul.f32 1.442695, %v594_v59 }
 0x1c3   : > { %v575_v44 = vpop.xlane.xlu1 %574 }
 0x1c4   : > { %v579_v46 = vpop.xlane.xlu2 %578  ;;  %v588_v47 = vmax.f32 %v564_v42, %v575_v44 }
 0x1c5   : > { %v590_v48 = vmax.f32 %v566_v43, %v579_v46  ;;  %v573_v49 = vpop.xlane.xlu0 %572 }
 0x1c6   : > { %696 = vst.msk [vmem:[%s2678_s28 + $0x10] sm:$0xff] %vm693_vm1, %v588_v47  ;;  %v587_v50 = vmax.f32 %v563_v45, %v573_v49  ;;  %630 = vperm.xlu2 %1915, %v588_v47   ;;  %v596_v6 = vsub.f32 %v564_v42, %v588_v47 }
 0x1c7   : > { %698 = vst.msk [vmem:[%s2678_s28 + $0x20] sm:$0xff] %vm693_vm1, %v590_v48  ;;  %v598_v1 = vsub.f32 %v566_v43, %v590_v48 }
 0x1c8   : > { %951 = vst.msk [vmem:[#allocation4 + $0x20] sm:$0xff] %vm693_vm1, %v590_v48  ;;  %v595_v51 = vsub.f32 %v563_v45, %v587_v50  ;;  %625 = vperm.xlu1 %1914, %v587_v50   ;;  %v606_v11 = vmul.f32 1.442695, %v596_v6 }
 0x1c9   : > { %949 = vst.msk [vmem:[#allocation4 + $0x10] sm:$0xff] %vm693_vm1, %v588_v47  ;;  %v610_v5 = vmul.f32 1.442695, %v598_v1 }
 0x1ca   : > { %695 = vst.msk [vmem:[%s2678_s28 + $0x8] sm:$0xff] %vm693_vm1, %v587_v50  ;;  %v604_v55 = vmul.f32 1.442695, %v595_v51 }
 0x1cb   : > { %948 = vst.msk [vmem:[#allocation4 + $0x8] sm:$0xff] %vm693_vm1, %v587_v50  ;;  %v577_v54 = vpop.xlane.xlu1 %576 }
 0x1cc   : > { %v581_v56 = vpop.xlane.xlu2 %580  ;;  %v589_v57 = vmax.f32 %v565_v52, %v577_v54  ;;  %1916 = vpow2.f32 %v604_v55 }
 0x1cd   : > { %v591_v58 = vmax.f32 %v567_v53, %v581_v56  ;;  %1918 = vpow2.f32 %v602_v62 }
 0x1ce   : > { %697 = vst.msk [vmem:[%s2678_s28 + $0x18] sm:$0xff] %vm693_vm1, %v589_v57  ;;  %v597_v60 = vsub.f32 %v565_v52, %v589_v57 }
 0x1cf   : > { %699 = vst.msk [vmem:[%s2678_s28 + $0x28] sm:$0xff] %vm693_vm1, %v591_v58  ;;  %645 = vperm.xlu0 %1913, %v591_v58   ;;  %v599_v15 = vsub.f32 %v567_v53, %v591_v58 }
 0x1d0   : > { %952 = vst.msk [vmem:[#allocation4 + $0x28] sm:$0xff] %vm693_vm1, %v591_v58  ;;  %635 = vperm.xlu1 %1914, %v589_v57   ;;  %v608_v63 = vmul.f32 1.442695, %v597_v60 }
 0x1d1   : > { %950 = vst.msk [vmem:[#allocation4 + $0x18] sm:$0xff] %vm693_vm1, %v589_v57  ;;  %v612_v19 = vmul.f32 1.442695, %v599_v15 }
 0x1d2   : > { %v2698_v3 = vpop.eup %1916  ;;  %1920 = vpow2.f32 %v608_v63 }
 0x1d3   : > { %v2706_v10 = vpop.eup %1918  ;;  %1922 = vpow2.f32 %v610_v5 }
 0x1d4   : > { %v583_v0 = vpop.xlane.xlu2 %582 }
 0x1d5   : > { %v592_v2 = vmax.f32 %v568_v61, %v583_v0 }
 0x1d7   : > { %v600_v4 = vsub.f32 %v568_v61, %v592_v2  ;;  %700 = vst.msk [vmem:[%s2678_s28 + $0x30] sm:$0xff] %vm693_vm1, %v592_v2  ;;  %650 = vperm.xlu2 %1915, %v592_v2   ;;  %765 = vperm.xlu0 %1913, %v2698_v3  }
 0x1d8   : > { %953 = vst.msk [vmem:[#allocation4 + $0x30] sm:$0xff] %vm693_vm1, %v592_v2  ;;  %640 = vperm.xlu1 %1914, %v590_v48   ;;  %v2711_v13 = vpop.eup %1920 }
 0x1d9   : > { %v614_v7 = vmul.f32 1.442695, %v600_v4  ;;  %v2723_v17 = vpop.eup %1922 }
 0x1db   : > { %1924 = vpow2.f32 %v614_v7 }
 0x1dc   : > { %v585_v9 = vpop.xlane.xlu2 %584  ;;  %1926 = vpow2.f32 %v606_v11 }
 0x1dd   : > { %v2709_v12 = vmax.f32 %v2704_v8, %v585_v9  ;;  %1928 = vpow2.f32 %v612_v19 }
 0x1df   : > { %v601_v14 = vsub.f32 %v2704_v8, %v2709_v12  ;;  %701 = vst.msk [vmem:[%s2678_s28 + $0x38] sm:$0xff] %vm693_vm1, %v2709_v12  ;;  %760 = vperm.xlu2 %1915, %v2706_v10   ;;  %775 = vperm.xlu0 %1913, %v2711_v13  }
 0x1e0   : > { %954 = vst.msk [vmem:[#allocation4 + $0x38] sm:$0xff] %vm693_vm1, %v2709_v12  ;;  %655 = vperm.xlu1 %1914, %v2709_v12  }
 0x1e1   : > { %v2725_v18 = vpop.eup %1924  ;;  %v616_v9 = vmul.f32 1.442695, %v601_v14 }
 0x1e2   : > { %v2727_v20 = vpop.eup %1926 }
 0x1e3   : > { %v2732_v22 = vpop.eup %1928 }
 0x1e7   : > { %790 = vperm.xlu0 %1913, %v2725_v18   ;;  %780 = vperm.xlu2 %1915, %v2723_v17  }
 0x1e8   : > { %770 = vperm.xlu1 %1914, %v2727_v20  }
 0x1f0   : > { %785 = vperm.xlu1 %1914, %v2732_v22  }
 0x220   : > { %v631_v32 = vpop.permute.xlu2 %630 }
 0x221   : > { %v660_v33 = vsub.f32 %v2650_v21, %v631_v32 }
 0x223   : > { %v670_v36 = vmul.f32 1.442695, %v660_v33 }
 0x225   : > { %1930 = vpow2.f32 %v670_v36  ;;  %v704_v36 = vld [vmem:[#allocation5 + $0x10] sm:$0xff] }
 0x226   : > { %v712_v38 = vmul.f32 %v2727_v20, %v704_v36 }
 0x22b   : > { %v1931_v40 = vpop.eup %1930 }
 0x22c   : > { %686 = vst [vmem:[%s2746_s1 + $0x10] sm:$0xff] %v1931_v40  ;;  %722 = vadd.xlane.f32.xlu1 %v1931_v40  ;;  %v808_v2 = vpack.c.bf16 %v1931_v40, %v1931_v40 }
 0x22e   : > { %v840_v6 = vunpack.c.l.b16 %v808_v2 }
 0x231   : > { %v651_v41 = vpop.permute.xlu2 %650 }
 0x232   : > { %v664_v21 = vsub.f32 %v2668_v34, %v651_v41  ;;  %v621_v42 = vpop.permute.xlu0 %620 }
 0x233   : > { %v658_v43 = vsub.f32 %v2644_v16, %v621_v42 }
 0x234   : > { %v678_v44 = vmul.f32 1.442695, %v664_v21 }
 0x235   : > { %v666_v45 = vmul.f32 1.442695, %v658_v43  ;;  %v702_v43 = vld [vmem:[#allocation5] sm:$0xff] }
 0x236   : > { %1932 = vpow2.f32 %v678_v44  ;;  %v710_v44 = vmul.f32 %v2706_v10, %v702_v43 }
 0x237   : > { %1934 = vpow2.f32 %v666_v45 }
 0x239   : > { %v761_v21 = vpop.permute.xlu2 %760 }
 0x23a   : > { %v626_v46 = vpop.permute.xlu1 %625 }
 0x23b   : > { %v659_v47 = vsub.f32 %v2654_v25, %v626_v46 }
 0x23c   : > { %v2752_v48 = vpop.eup %1932 }
 0x23d   : > { %v1935_v49 = vpop.eup %1934  ;;  %690 = vst [vmem:[%s2746_s1 + $0x30] sm:$0xff] %v2752_v48  ;;  %v668_v50 = vmul.f32 1.442695, %v659_v47  ;;  %v812_v8 = vpack.c.bf16 %v2752_v48, %v2752_v48 }
 0x23e   : > { %684 = vst [vmem:[%s2746_s1] sm:$0xff] %v1935_v49  ;;  %718 = vadd.xlane.f32.xlu0 %v1935_v49  ;;  %v806_v54 = vpack.c.bf16 %v1935_v49, %v1935_v49 }
 0x23f   : > { %1936 = vpow2.f32 %v668_v50  ;;  %v844_v14 = vunpack.c.l.b16 %v812_v8 }
 0x240   : > { %v838_v57 = vunpack.c.l.b16 %v806_v54 }
 0x241   : > { %v646_v34 = vpop.permute.xlu0 %645  ;;  %v781_v45 = vpop.permute.xlu2 %780 }
 0x242   : > { %v663_v16 = vsub.f32 %v2663_v31, %v646_v34  ;;  %v636_v51 = vpop.permute.xlu1 %635  ;;  %v707_v34 = vld [vmem:[#allocation5 + $0x28] sm:$0xff] }
 0x243   : > { %v661_v52 = vsub.f32 %v2661_v30, %v636_v51  ;;  %v715_v51 = vmul.f32 %v2732_v22, %v707_v34 }
 0x244   : > { %v676_v53 = vmul.f32 1.442695, %v663_v16  ;;  %v705_v16 = vld [vmem:[#allocation5 + $0x18] sm:$0xff] }
 0x245   : > { %v1937_v25 = vpop.eup %1936  ;;  %v672_v55 = vmul.f32 1.442695, %v661_v52 }
 0x246   : > { %685 = vst [vmem:[%s2746_s1 + $0x8] sm:$0xff] %v1937_v25  ;;  %1938 = vpow2.f32 %v676_v53  ;;  %720 = vadd.xlane.f32.xlu2 %v1937_v25  ;;  %v807_v56 = vpack.c.bf16 %v1937_v25, %v1937_v25  ;;  %v713_v53 = vmul.f32 %v2711_v13, %v705_v16 }
 0x247   : > { %1940 = vpow2.f32 %v672_v55  ;;  %v708_v55 = vld [vmem:[#allocation5 + $0x30] sm:$0xff] }
 0x248   : > { %v839_v58 = vunpack.c.l.b16 %v807_v56  ;;  %v706_v56 = vld [vmem:[#allocation5 + $0x20] sm:$0xff] }
 0x249   : > { %v766_v33 = vpop.permute.xlu0 %765  ;;  %v714_v22 = vmul.f32 %v2723_v17, %v706_v56 }
 0x24a   : > { %v641_v59 = vpop.permute.xlu1 %640  ;;  %v846_v60 = vpack.c.b16 %v839_v58, %v838_v57  ;;  %v716_v57 = vmul.f32 %v2725_v18, %v708_v55 }
 0x24b   : > { %v662_v31 = vsub.f32 %v2652_v23, %v641_v59 }
 0x24c   : > { %v1939_v61 = vpop.eup %1938  ;;  %910 = vmatmul.bf16.vlgmr.msra.gmra.mxu1 %v846_v60 }
 0x24d   : > { %v1941_v30 = vpop.eup %1940  ;;  %689 = vst [vmem:[%s2746_s1 + $0x28] sm:$0xff] %v1939_v61  ;;  %v674_v62 = vmul.f32 1.442695, %v662_v31  ;;  %728 = vadd.xlane.f32.xlu1 %v1939_v61  ;;  %v811_v15 = vpack.c.bf16 %v1939_v61, %v1939_v61 }
 0x24e   : > { %687 = vst [vmem:[%s2746_s1 + $0x18] sm:$0xff] %v1941_v30  ;;  %724 = vadd.xlane.f32.xlu2 %v1941_v30  ;;  %v809_v0 = vpack.c.bf16 %v1941_v30, %v1941_v30 }
 0x24f   : > { %1942 = vpow2.f32 %v674_v62  ;;  %v843_v26 = vunpack.c.l.b16 %v811_v15  ;;  %v751_v62 = vld [vmem:[#allocation6] sm:$0xff] }
 0x250   : > { %v841_v23 = vunpack.c.l.b16 %v809_v0  ;;  %v799_v0 = vmul.f32 %v766_v33, %v751_v62 }
 0x251   : > { %v776_v39 = vpop.permute.xlu0 %775 }
 0x252   : > { %v656_v63 = vpop.permute.xlu1 %655  ;;  %v847_v7 = vpack.c.b16 %v841_v23, %v840_v6  ;;  %v752_v23 = vld [vmem:[#allocation6 + $0x18] sm:$0xff] }
 0x253   : > { %v665_v1 = vsub.f32 %v2672_v37, %v656_v63  ;;  %v709_v63 = vld [vmem:[#allocation5 + $0x38] sm:$0xff] }
 0x255   : > { %v1943_v4 = vpop.eup %1942  ;;  %v680_v5 = vmul.f32 1.442695, %v665_v1  ;;  %730 = vadd.xlane.f32.xlu1 %v2752_v48  ;;  %v703_v48 = vld [vmem:[#allocation5 + $0x8] sm:$0xff] }
 0x256   : > { %688 = vst [vmem:[%s2746_s1 + $0x20] sm:$0xff] %v1943_v4  ;;  %726 = vadd.xlane.f32.xlu0 %v1943_v4  ;;  %v810_v37 = vpack.c.bf16 %v1943_v4, %v1943_v4  ;;  %v711_v49 = vmul.f32 %v2698_v3, %v703_v48  ;;  %v750_v3 = vld [vmem:[#allocation6 + $0x30] sm:$0xff] }
 0x257   : > { %1944 = vpow2.f32 %v680_v5  ;;  %v798_v58 = vmul.f32 %v761_v21, %v750_v3 }
 0x258   : > { %1946 = vpow2.f32 %v616_v9  ;;  %v842_v24 = vunpack.c.l.b16 %v810_v37  ;;  %v753_v9 = vld [vmem:[#allocation6 + $0x10] sm:$0xff] }
 0x259   : > { %v2779_v42 = vpop.permute.xlu0 %790 }
 0x25a   : > { %v848_v27 = vpack.c.b16 %v843_v26, %v842_v24  ;;  %v771_v32 = vpop.permute.xlu1 %770  ;;  %v754_v24 = vld [vmem:[#allocation6 + $0x8] sm:$0xff] }
 0x25b   : > { %v800_v17 = vmul.f32 %v771_v32, %v752_v23  ;;  %v802_v26 = vmul.f32 %v781_v45, %v754_v24 }
 0x25c   : > { %915 = vmatmul.bf16.gmra.mxu1 %v847_v7 }
 0x25d   : > { %v1945_v11 = vpop.eup %1944 }
 0x25e   : > { %691 = vst [vmem:[%s2746_s1 + $0x38] sm:$0xff] %v1945_v11  ;;  %732 = vadd.xlane.f32.xlu0 %v1945_v11  ;;  %v2770_v19 = vpop.eup %1946  ;;  %v813_v28 = vpack.c.bf16 %v1945_v11, %v1945_v11  ;;  %v801_v11 = vmul.f32 %v776_v39, %v753_v9 }
 0x25f   : > { %v717_v18 = vmul.f32 %v2770_v19, %v709_v63 }
 0x260   : > { %v845_v12 = vunpack.c.l.b16 %v813_v28  ;;  %v755_v28 = vld [vmem:[#allocation6 + $0x20] sm:$0xff] }
 0x262   : > { %v849_v29 = vpack.c.b16 %v845_v12, %v844_v14  ;;  %v2775_v35 = vpop.permute.xlu1 %785 }
 0x263   : > { %v803_v8 = vmul.f32 %v2775_v35, %v755_v28 }
 0x266   : > { %795 = vperm.xlu2 %1915, %v2770_v19  }
 0x26c   : > { %920 = vmatmul.bf16.gmra.mxu1 %v848_v27 }
 0x27c   : > { %925 = vmatmul.bf16.gmra.mxu1 %v849_v29  ;;  %v756_v29 = vld [vmem:[#allocation6 + $0x28] sm:$0xff] }
 0x27d   : > { %v804_v32 = vmul.f32 %v2779_v42, %v756_v29 }
 0x29f   : > { %v723_v40 = vpop.xlane.xlu1 %722 }
 0x2a0   : > { %v736_v41 = vadd.f32 %v723_v40, %v712_v38  ;;  %v757_v38 = vld [vmem:[#allocation6 + $0x38] sm:$0xff] }
 0x2a2   : > { %744 = vst.msk [vmem:[#allocation5 + $0x10] sm:$0xff] %vm693_vm1, %v736_v41 }
 0x2b1   : > { %v719_v46 = vpop.xlane.xlu0 %718 }
 0x2b2   : > { %v734_v47 = vadd.f32 %v719_v46, %v710_v44 }
 0x2b4   : > { %742 = vst.msk [vmem:[#allocation5] sm:$0xff] %vm693_vm1, %v734_v47 }
 0x2b9   : > { %v721_v20 = vpop.xlane.xlu2 %720 }
 0x2ba   : > { %v735_v50 = vadd.f32 %v721_v20, %v711_v49 }
 0x2bc   : > { %743 = vst.msk [vmem:[#allocation5 + $0x8] sm:$0xff] %vm693_vm1, %v735_v50 }
 0x2c0   : > { %v729_v52 = vpop.xlane.xlu1 %728 }
 0x2c1   : > { %v739_v10 = vadd.f32 %v729_v52, %v715_v51  ;;  %v725_v54 = vpop.xlane.xlu2 %724 }
 0x2c2   : > { %v737_v25 = vadd.f32 %v725_v54, %v713_v53 }
 0x2c3   : > { %747 = vst.msk [vmem:[#allocation5 + $0x28] sm:$0xff] %vm693_vm1, %v739_v10 }
 0x2c4   : > { %745 = vst.msk [vmem:[#allocation5 + $0x18] sm:$0xff] %vm693_vm1, %v737_v25 }
 0x2c8   : > { %v731_v59 = vpop.xlane.xlu1 %730 }
 0x2c9   : > { %v740_v60 = vadd.f32 %v731_v59, %v716_v57  ;;  %v911_v31 = vpop.f32.mrf.mxu1  ;;  %v727_v13 = vpop.xlane.xlu0 %726 }
 0x2ca   : > { %v931_v61 = vadd.f32 %v911_v31, %v798_v58  ;;  %v738_v30 = vadd.f32 %v727_v13, %v714_v22  ;;  %v796_v39 = vpop.permute.xlu2 %795 }
 0x2cb   : > { %748 = vst.msk [vmem:[#allocation5 + $0x30] sm:$0xff] %vm693_vm1, %v740_v60  ;;  %v805_v40 = vmul.f32 %v796_v39, %v757_v38 }
 0x2cc   : > { %939 = vst [vmem:[#allocation6 + $0x30] sm:$0xff] %v931_v61 }
 0x2cd   : > { %746 = vst.msk [vmem:[#allocation5 + $0x20] sm:$0xff] %vm693_vm1, %v738_v30 }
 0x2d1   : > { %v913_v1 = vpop.f32.mrf.mxu1  ;;  %v733_v4 = vpop.xlane.xlu0 %732 }
 0x2d2   : > { %v932_v2 = vadd.f32 %v913_v1, %v799_v0  ;;  %v741_v5 = vadd.f32 %v733_v4, %v717_v18 }
 0x2d4   : > { %940 = vst [vmem:[#allocation6] sm:$0xff] %v932_v2 }
 0x2d5   : > { %749 = vst.msk [vmem:[#allocation5 + $0x38] sm:$0xff] %vm693_vm1, %v741_v5 }
 0x2d9   : > { %v916_v6 = vpop.f32.mrf.mxu1 }
 0x2da   : > { %v933_v7 = vadd.f32 %v916_v6, %v800_v17 }
 0x2dc   : > { %941 = vst [vmem:[#allocation6 + $0x18] sm:$0xff] %v933_v7 }
 0x2e1   : > { %v918_v37 = vpop.f32.mrf.mxu1 }
 0x2e2   : > { %v934_v15 = vadd.f32 %v918_v37, %v801_v11 }
 0x2e4   : > { %942 = vst [vmem:[#allocation6 + $0x10] sm:$0xff] %v934_v15 }
 0x2e9   : > { %v921_v27 = vpop.f32.mrf.mxu1 }
 0x2ea   : > { %v935_v19 = vadd.f32 %v921_v27, %v802_v26 }
 0x2ec   : > { %943 = vst [vmem:[#allocation6 + $0x8] sm:$0xff] %v935_v19 }
 0x2f1   : > { %v923_v12 = vpop.f32.mrf.mxu1 }
 0x2f2   : > { %v936_v14 = vadd.f32 %v923_v12, %v803_v8 }
 0x2f4   : > { %944 = vst [vmem:[#allocation6 + $0x20] sm:$0xff] %v936_v14 }
 0x2f9   : > { %v926_v33 = vpop.f32.mrf.mxu1 }
 0x2fa   : > { %v937_v36 = vadd.f32 %v926_v33, %v804_v32 }
 0x2fc   : > { %945 = vst [vmem:[#allocation6 + $0x28] sm:$0xff] %v937_v36 }
 0x300   : > { %958 = sbr.rel (%p1706_p8) target bundleno = 967 (0x3c7), region = 60 }
 0x301   : > { %v928_v41 = vpop.f32.mrf.mxu1 }
 0x302   : > { %v938_v21 = vadd.f32 %v928_v41, %v805_v40 }
 0x304   : > { %946 = vst [vmem:[#allocation6 + $0x38] sm:$0xff] %v938_v21 }
 0x305   : > { %v963_v43 = vld [vmem:[#allocation5 + $0x20] sm:$0xff]  ;;  %v2798_v35 = vld [vmem:[#allocation5 + $0x10] sm:$0xff]  ;;  %v2315_v45 = vmov 0   ;;  %v2803_v47 = vld [vmem:[#allocation5 + $0x28] sm:$0xff] }
 0x306   : > { %v2800_v44 = vld [vmem:[#allocation5] sm:$0xff]  ;;  %1950 = vset.pattern.permute.xlu2 %v2315_v45  ;;  %1949 = vset.pattern.permute.xlu1 %v2315_v45  ;;  %1951 = vrcp.f32 %v963_v43  ;;  %v1036_v42 = vand.u32 2147483647, %v963_v43  ;;  %v1038_v46 = vand.u32 2147483648, %v963_v43  ;;  %v1006_v48 = vand.u32 2147483647, %v2798_v35 }
 0x307   : > { %1948 = vset.pattern.permute.xlu0 %v2315_v45  ;;  %1953 = vrcp.f32 %v2798_v35  ;;  %v1008_v49 = vand.u32 2147483648, %v2798_v35  ;;  %v2808_v20 = vld [vmem:[#allocation5 + $0x18] sm:$0xff]  ;;  %v976_v50 = vand.u32 2147483647, %v2800_v44  ;;  %v978_v34 = vand.u32 2147483648, %v2800_v44  ;;  %v2815_v51 = vld [vmem:[#allocation5 + $0x8] sm:$0xff] }
 0x308   : > { %1955 = vrcp.f32 %v2800_v44  ;;  %vm1032_vm2 = vweird.f32 %v963_v43  ;;  %vm1002_vm3 = vweird.f32 %v2798_v35  ;;  %v1053_v16 = vand.u32 2147483648, %v2803_v47  ;;  %v2834_v59 = vld [vmem:[#allocation5 + $0x38] sm:$0xff]  ;;  %v2917_v45 = vld [vmem:[#allocation5 + $0x30] sm:$0xff]  ;;  %v2940_v52 = vld [vmem:[#allocation4] sm:$0xff] }
 0x309   : > { %1957 = vrcp.f32 %v2803_v47  ;;  %vm2817_vm4 = vcmp.eq.f32.partialorder %v1036_v42, 8.507059e+37  ;;  %v1039_v53 = vor.u32 1.1754944e-38, %v1038_v46  ;;  %vm972_vm5 = vweird.f32 %v2800_v44  ;;  %v2998_v15 = vld [vmem:[#allocation4 + $0x30] sm:$0xff] }
 0x30a   : > { %1959 = vrcp.f32 %v2808_v20  ;;  %vm2823_vm6 = vcmp.eq.f32.partialorder %v1006_v48, 8.507059e+37  ;;  %v1009_v25 = vor.u32 1.1754944e-38, %v1008_v49  ;;  %vm1047_vm7 = vweird.f32 %v2803_v47 }
 0x30b   : > { %v1051_v55 = vand.u32 2147483647, %v2803_v47  ;;  %vm2829_vm8 = vcmp.eq.f32.partialorder %v976_v50, 8.507059e+37  ;;  %v979_v58 = vor.u32 1.1754944e-38, %v978_v34  ;;  %1961 = vrcp.f32 %v2815_v51 }
 0x30c   : > { %v1952_v10 = vpop.eup %1951  ;;  %v2837_v22 = vor.u32 1.1754944e-38, %v1053_v16  ;;  %vm1017_vm9 = vweird.f32 %v2808_v20  ;;  %v1021_v61 = vand.u32 2147483647, %v2808_v20  ;;  %v1023_v62 = vand.u32 2147483648, %v2808_v20 }
 0x30d   : > { %v1954_v3 = vpop.eup %1953  ;;  %v1028_v56 = vmul.f32 %v1952_v10, %v963_v43  ;;  %vm1033_vm10 = vweird.f32 %v1952_v10  ;;  %vm987_vm12 = vweird.f32 %v2815_v51  ;;  %1963 = vrcp.f32 %v2834_v59 }
 0x30e   : > { %v1956_v60 = vpop.eup %1955  ;;  %v998_v31 = vmul.f32 %v1954_v3, %v2798_v35  ;;  %vm1003_vm11 = vweird.f32 %v1954_v3  ;;  %vm2851_vm14 = vcmp.eq.f32.partialorder %v1051_v55, 8.507059e+37  ;;  %vm2856_vm15 = vmor %vm1032_vm2, %vm1033_vm10  ;;  %v991_v7 = vand.u32 2147483647, %v2815_v51  ;;  %v1161_v55 = vld [vmem:[#allocation3 + $0x10] sm:$0xff] }
 0x30f   : > { %v1029_v13 = vsub.f32 1.0, %v1028_v56  ;;  %v968_v30 = vmul.f32 %v1956_v60, %v2800_v44  ;;  %v2843_v63 = vpop.eup %1957  ;;  %vm973_vm13 = vweird.f32 %v1956_v60  ;;  %v993_v9 = vand.u32 2147483648, %v2815_v51  ;;  %vm2867_vm0 = vmor %vm1002_vm3, %vm1003_vm11 }
 0x310   : > { %v999_v0 = vsub.f32 1.0, %v998_v31  ;;  %v2847_v1 = vpop.eup %1959  ;;  %v1043_v4 = vmul.f32 %v2843_v63, %v2803_v47  ;;  %vm1048_vm1 = vweird.f32 %v2843_v63  ;;  %vm2875_vm2 = vmor %vm972_vm5, %vm973_vm13  ;;  %1965 = vrcp.f32 %v2917_v45  ;;  %v1162_v31 = vld [vmem:[#allocation3 + $0x18] sm:$0xff] }
 0x311   : > { %v1030_v18 = vmul.f32 %v1952_v10, %v1029_v13  ;;  %v969_v2 = vsub.f32 1.0, %v968_v30  ;;  %v1013_v6 = vmul.f32 %v2847_v1, %v2808_v20  ;;  %v1962_v11 = vpop.eup %1961  ;;  %vm1018_vm10 = vweird.f32 %v2847_v1  ;;  %vm2894_vm5 = vmor %vm1047_vm7, %vm1048_vm1 }
 0x312   : > { %v1000_v17 = vmul.f32 %v1954_v3, %v999_v0  ;;  %v1044_v26 = vsub.f32 1.0, %v1043_v4  ;;  %v983_v8 = vmul.f32 %v1962_v11, %v2815_v51  ;;  %vm988_vm3 = vweird.f32 %v1962_v11  ;;  %v2950_v51 = vld [vmem:[#allocation4 + $0x10] sm:$0xff] }
 0x313   : > { %v1031_v37 = vadd.f32 %v1952_v10, %v1030_v18  ;;  %v970_v24 = vmul.f32 %v1956_v60, %v969_v2  ;;  %v1014_v28 = vsub.f32 1.0, %v1013_v6  ;;  %v2884_v32 = vpop.eup %1963  ;;  %v1024_v20 = vor.u32 1.1754944e-38, %v1023_v62  ;;  %vm2936_vm7 = vmor %vm987_vm12, %vm988_vm3 }
 0x314   : > { %v1001_v27 = vadd.f32 %v1954_v3, %v1000_v17  ;;  %v1045_v29 = vmul.f32 %v2843_v63, %v1044_v26  ;;  %v984_v40 = vsub.f32 1.0, %v983_v8  ;;  %v1073_v44 = vmul.f32 %v2884_v32, %v2834_v59 }
 0x315   : > { %v1035_v12 = vsel %vm2856_vm15, %v1952_v10, %v1031_v37  ;;  %v971_v14 = vadd.f32 %v1956_v60, %v970_v24  ;;  %v1015_v39 = vmul.f32 %v2847_v1, %v1014_v28  ;;  %v994_v34 = vor.u32 1.1754944e-38, %v993_v9  ;;  %v1164_v9 = vld [vmem:[#allocation3 + $0x28] sm:$0xff]  ;;  %v1165_v24 = vld [vmem:[#allocation3 + $0x30] sm:$0xff] }
 0x316   : > { %v2888_v33 = vsel %vm2817_vm4, %v1039_v53, %v1035_v12  ;;  %v1005_v36 = vsel %vm2867_vm0, %v1954_v3, %v1001_v27  ;;  %v1046_v43 = vadd.f32 %v2843_v63, %v1045_v29  ;;  %vm2911_vm4 = vmor %vm1017_vm9, %vm1018_vm10  ;;  %v985_v48 = vmul.f32 %v1962_v11, %v984_v40  ;;  %v1159_v53 = vld [vmem:[#allocation3] sm:$0xff]  ;;  %v2952_v3 = vld [vmem:[#allocation4 + $0x8] sm:$0xff]  ;;  %v1966_v17 = vpop.eup %1965 }
 0x317   : > { %1125 = vperm.xlu2 %1950, %v2888_v33   ;;  %v2902_v41 = vsel %vm2823_vm6, %v1009_v25, %v1005_v36  ;;  %v975_v21 = vsel %vm2875_vm2, %v1956_v60, %v971_v14  ;;  %v1016_v46 = vadd.f32 %v2847_v1, %v1015_v39  ;;  %vm2925_vm6 = vcmp.eq.f32.partialorder %v1021_v61, 8.507059e+37  ;;  %v2957_v60 = vld [vmem:[#allocation4 + $0x18] sm:$0xff]  ;;  %v1091_v14 = vld [vmem:[#allocation4 + $0x20] sm:$0xff] }
 0x318   : > { %1115 = vperm.xlu1 %1949, %v2902_v41   ;;  %v2922_v42 = vsel %vm2829_vm8, %v979_v58, %v975_v21  ;;  %v1050_v49 = vsel %vm2894_vm5, %v2843_v63, %v1046_v43  ;;  %v1074_v16 = vsub.f32 1.0, %v1073_v44  ;;  %v986_v54 = vadd.f32 %v1962_v11, %v985_v48  ;;  %v1160_v58 = vld [vmem:[#allocation3 + $0x8] sm:$0xff]  ;;  %v1163_v29 = vld [vmem:[#allocation3 + $0x20] sm:$0xff] }
 0x319   : > { %1105 = vperm.xlu0 %1948, %v2922_v42   ;;  %v1020_v10 = vsel %vm2911_vm4, %v2847_v1, %v1016_v46  ;;  %vm2945_vm8 = vcmp.eq.f32.partialorder %v991_v7, 8.507059e+37  ;;  %vm1077_vm9 = vweird.f32 %v2834_v59  ;;  %v1081_v57 = vand.u32 2147483647, %v2834_v59  ;;  %v2989_v7 = vld [vmem:[#allocation4 + $0x28] sm:$0xff]  ;;  %v1264_v48 = vld [vmem:[#allocation3 + $0x40] sm:$0xff] }
 0x31a   : > { %v1075_v56 = vmul.f32 %v2884_v32, %v1074_v16  ;;  %v2962_v61 = vsel %vm2851_vm14, %v2837_v22, %v1050_v49  ;;  %v990_v13 = vsel %vm2936_vm7, %v1962_v11, %v986_v54  ;;  %vm1078_vm11 = vweird.f32 %v2884_v32 }
 0x31b   : > { %v1167_v30 = vsub.f32 %v1159_v53, %v2940_v52  ;;  %v2970_v62 = vsel %vm2925_vm6, %v1024_v20, %v1020_v10  ;;  %v2974_v63 = vsel %vm2945_vm8, %v994_v34, %v990_v13  ;;  %v1083_v0 = vand.u32 2147483648, %v2834_v59  ;;  %vm2984_vm12 = vmor %vm1077_vm9, %vm1078_vm11  ;;  %v1265_v20 = vld [vmem:[#allocation3 + $0x48] sm:$0xff]  ;;  %v1094_v53 = vld [vmem:[#allocation4 + $0x38] sm:$0xff] }
 0x31c   : > { %v1169_v22 = vsub.f32 %v1161_v55, %v2950_v51  ;;  %v1076_v1 = vadd.f32 %v2884_v32, %v1075_v56  ;;  %v1168_v2 = vsub.f32 %v1160_v58, %v2952_v3  ;;  %v1170_v4 = vsub.f32 %v1162_v31, %v2957_v60  ;;  %v1166_v10 = vld [vmem:[#allocation3 + $0x38] sm:$0xff] }
 0x31d   : > { %v1175_v18 = vmul.f32 1.442695, %v1167_v30  ;;  %vm2992_vm13 = vcmp.eq.f32.partialorder %v1081_v57, 8.507059e+37  ;;  %v1084_v59 = vor.u32 1.1754944e-38, %v1083_v0  ;;  %v1058_v37 = vmul.f32 %v1966_v17, %v2917_v45  ;;  %v1267_v0 = vld [vmem:[#allocation3 + $0x58] sm:$0xff] }
 0x31e   : > { %v1179_v23 = vmul.f32 1.442695, %v1169_v22  ;;  %v1181_v6 = vmul.f32 1.442695, %v1170_v4  ;;  %vm1062_vm14 = vweird.f32 %v2917_v45  ;;  %v1080_v26 = vsel %vm2984_vm12, %v2884_v32, %v1076_v1  ;;  %v1268_v1 = vld [vmem:[#allocation3 + $0x60] sm:$0xff] }
 0x31f   : > { %1130 = vperm.xlu2 %1950, %v2962_v61   ;;  %1967 = vpow2.f32 %v1175_v18  ;;  %v1066_v27 = vand.u32 2147483647, %v2917_v45  ;;  %v1068_v19 = vand.u32 2147483648, %v2917_v45  ;;  %v1177_v28 = vmul.f32 1.442695, %v1168_v2  ;;  %v1266_v2 = vld [vmem:[#allocation3 + $0x50] sm:$0xff] }
 0x320   : > { %1120 = vperm.xlu1 %1949, %v2970_v62   ;;  %v1059_v8 = vsub.f32 1.0, %v1058_v37  ;;  %vm1063_vm15 = vweird.f32 %v1966_v17  ;;  %1969 = vpow2.f32 %v1179_v23  ;;  %v1172_v12 = vsub.f32 %v1164_v9, %v2989_v7  ;;  %v1270_v37 = vld [vmem:[#allocation3 + $0x70] sm:$0xff] }
 0x321   : > { %1110 = vperm.xlu0 %1948, %v2974_v63   ;;  %1971 = vpow2.f32 %v1181_v6  ;;  %v1173_v36 = vsub.f32 %v1165_v24, %v2998_v15  ;;  %v3009_v38 = vsel %vm2992_vm13, %v1084_v59, %v1080_v26  ;;  %vm3013_vm0 = vmor %vm1062_vm14, %vm1063_vm15  ;;  %v1069_v21 = vor.u32 1.1754944e-38, %v1068_v19  ;;  %v1271_v26 = vld [vmem:[#allocation3 + $0x78] sm:$0xff]  ;;  %v1269_v19 = vld [vmem:[#allocation3 + $0x68] sm:$0xff] }
 0x322   : > { %v1060_v32 = vmul.f32 %v1966_v17, %v1059_v8  ;;  %1973 = vpow2.f32 %v1177_v28  ;;  %v1171_v43 = vsub.f32 %v1163_v29, %v1091_v14  ;;  %vm1067_vm1 = vcmp.eq.f32.partialorder %v1066_v27, 8.507059e+37 }
 0x323   : > { %v1185_v46 = vmul.f32 1.442695, %v1172_v12  ;;  %v1187_v47 = vmul.f32 1.442695, %v1173_v36  ;;  %v1272_v54 = vsub.f32 %v1264_v48, %v2940_v52  ;;  %v1273_v56 = vsub.f32 %v1265_v20, %v2952_v3 }
 0x324   : > { %v1061_v35 = vadd.f32 %v1966_v17, %v1060_v32  ;;  %v1183_v16 = vmul.f32 1.442695, %v1171_v43  ;;  %v1174_v58 = vsub.f32 %v1166_v10, %v1094_v53  ;;  %v1275_v3 = vsub.f32 %v1267_v0, %v2957_v60  ;;  %v1202_v10 = vld [vmem:[#allocation2 + $0x18] sm:$0xff] }
 0x325   : > { %v1968_v39 = vpop.eup %1967  ;;  %1975 = vpow2.f32 %v1185_v46  ;;  %v1280_v13 = vmul.f32 1.442695, %v1272_v54  ;;  %v1282_v30 = vmul.f32 1.442695, %v1273_v56  ;;  %v1276_v23 = vsub.f32 %v1268_v1, %v1091_v14 }
 0x326   : > { %v1191_v44 = vmul.f32 %v1968_v39, %v2922_v42  ;;  %v1970_v49 = vpop.eup %1969  ;;  %v1065_v45 = vsel %vm3013_vm0, %v1966_v17, %v1061_v35  ;;  %1977 = vpow2.f32 %v1187_v47  ;;  %v1189_v18 = vmul.f32 1.442695, %v1174_v58 }
 0x327   : > { %v1972_v50 = vpop.eup %1971  ;;  %v3021_v34 = vsel %vm1067_vm1, %v1069_v21, %v1065_v45  ;;  %v1193_v55 = vmul.f32 %v1970_v49, %v2902_v41  ;;  %1979 = vpow2.f32 %v1183_v16  ;;  %v1274_v6 = vsub.f32 %v1266_v2, %v2950_v51  ;;  %v1100_v45 = vld [vmem:[#allocation6 + $0x20] sm:$0xff] }
 0x328   : > { %1140 = vperm.xlu1 %1949, %v3009_v38   ;;  %1209 = vperm.xlu2 %1950, %v1191_v44   ;;  %v1974_v25 = vpop.eup %1973  ;;  %v1194_v57 = vmul.f32 %v1972_v50, %v2970_v62  ;;  %1981 = vpow2.f32 %v1280_v13  ;;  %v1286_v11 = vmul.f32 1.442695, %v1275_v3  ;;  %v1288_v59 = vmul.f32 1.442695, %v1276_v23  ;;  %v1096_v13 = vld [vmem:[#allocation6] sm:$0xff]  ;;  %v1102_v3 = vld [vmem:[#allocation6 + $0x38] sm:$0xff] }
 0x329   : > { %1135 = vperm.xlu0 %1948, %v3021_v34   ;;  %v1192_v31 = vmul.f32 %v1974_v25, %v2974_v63  ;;  %1983 = vpow2.f32 %v1282_v30  ;;  %v1284_v27 = vmul.f32 1.442695, %v1274_v6  ;;  %v1278_v28 = vsub.f32 %v1270_v37, %v2998_v15  ;;  %v1205_v30 = vld [vmem:[#allocation2 + $0x30] sm:$0xff] }
 0x32a   : > { %1985 = vpow2.f32 %v1189_v18  ;;  %v1279_v51 = vsub.f32 %v1271_v26, %v1094_v53  ;;  %v1277_v29 = vsub.f32 %v1269_v19, %v2989_v7  ;;  %v1097_v53 = vld [vmem:[#allocation6 + $0x18] sm:$0xff]  ;;  %v1201_v37 = vld [vmem:[#allocation2 + $0x10] sm:$0xff] }
 0x32b   : > { %v1976_v22 = vpop.eup %1975  ;;  %1987 = vpow2.f32 %v1286_v11  ;;  %v1292_v32 = vmul.f32 1.442695, %v1278_v28 }
 0x32c   : > { %v1978_v52 = vpop.eup %1977  ;;  %v1196_v5 = vmul.f32 %v1976_v22, %v2962_v61  ;;  %1989 = vpow2.f32 %v1288_v59  ;;  %v1294_v39 = vmul.f32 1.442695, %v1279_v51  ;;  %v1290_v43 = vmul.f32 1.442695, %v1277_v29  ;;  %v1204_v51 = vld [vmem:[#allocation2 + $0x28] sm:$0xff] }
 0x32d   : > { %v1980_v4 = vpop.eup %1979  ;;  %v1197_v17 = vmul.f32 %v1978_v52, %v3021_v34  ;;  %1991 = vpow2.f32 %v1284_v27  ;;  %v1200_v27 = vld [vmem:[#allocation2 + $0x8] sm:$0xff] }
 0x32e   : > { %v1195_v9 = vmul.f32 %v1980_v4, %v2888_v33  ;;  %v1982_v24 = vpop.eup %1981  ;;  %1993 = vpow2.f32 %v1292_v32  ;;  %v1306_v4 = vld [vmem:[#allocation2 + $0x48] sm:$0xff]  ;;  %v1203_v32 = vld [vmem:[#allocation2 + $0x20] sm:$0xff] }
 0x32f   : > { %v1984_v60 = vpop.eup %1983  ;;  %v1296_v12 = vmul.f32 %v1982_v24, %v2922_v42  ;;  %1995 = vpow2.f32 %v1294_v39  ;;  %v1309_v24 = vld [vmem:[#allocation2 + $0x60] sm:$0xff] }
 0x330   : > { %1219 = vperm.xlu1 %1949, %v1193_v55   ;;  %1224 = vperm.xlu2 %1950, %v1194_v57   ;;  %v1986_v8 = vpop.eup %1985  ;;  %v1297_v14 = vmul.f32 %v1984_v60, %v2974_v63  ;;  %1997 = vpow2.f32 %v1290_v43 }
 0x331   : > { %1214 = vperm.xlu0 %1948, %v1192_v31   ;;  %v1198_v36 = vmul.f32 %v1986_v8, %v3009_v38  ;;  %v1988_v40 = vpop.eup %1987  ;;  %v1098_v31 = vld [vmem:[#allocation6 + $0x10] sm:$0xff] }
 0x332   : > { %v1990_v21 = vpop.eup %1989  ;;  %v1299_v42 = vmul.f32 %v1988_v40, %v2970_v62 }
 0x333   : > { %v1992_v15 = vpop.eup %1991  ;;  %v1300_v63 = vmul.f32 %v1990_v21, %v2888_v33  ;;  %v1099_v33 = vld [vmem:[#allocation6 + $0x8] sm:$0xff] }
 0x334   : > { %v1298_v7 = vmul.f32 %v1992_v15, %v2902_v41  ;;  %v1994_v35 = vpop.eup %1993  ;;  %v1305_v15 = vld [vmem:[#allocation2 + $0x40] sm:$0xff] }
 0x335   : > { %v1996_v44 = vpop.eup %1995  ;;  %v1302_v47 = vmul.f32 %v1994_v35, %v3021_v34  ;;  %v1199_v34 = vld [vmem:[#allocation2] sm:$0xff] }
 0x336   : > { %v1998_v46 = vpop.eup %1997  ;;  %v1303_v48 = vmul.f32 %v1996_v44, %v3009_v38 }
 0x337   : > { %v1301_v62 = vmul.f32 %v1998_v46, %v2962_v61  ;;  %v1095_v61 = vld [vmem:[#allocation6 + $0x30] sm:$0xff]  ;;  %v1308_v46 = vld [vmem:[#allocation2 + $0x58] sm:$0xff] }
 0x338   : > { %1234 = vperm.xlu1 %1949, %v1196_v5   ;;  %1239 = vperm.xlu2 %1950, %v1197_v17   ;;  %v1101_v17 = vld [vmem:[#allocation6 + $0x28] sm:$0xff] }
 0x339   : > { %1229 = vperm.xlu0 %1948, %v1195_v9  }
 0x340   : > { %1315 = vperm.xlu1 %1949, %v1296_v12   ;;  %1320 = vperm.xlu2 %1950, %v1297_v14   ;;  %v1312_v14 = vld [vmem:[#allocation2 + $0x78] sm:$0xff] }
 0x341   : > { %1244 = vperm.xlu0 %1948, %v1198_v36  }
 0x348   : > { %1330 = vperm.xlu1 %1949, %v1299_v42   ;;  %1335 = vperm.xlu2 %1950, %v1300_v63   ;;  %v1206_v63 = vld [vmem:[#allocation2 + $0x38] sm:$0xff] }
 0x349   : > { %1325 = vperm.xlu0 %1948, %v1298_v7  }
 0x350   : > { %1345 = vperm.xlu1 %1949, %v1302_v47   ;;  %1350 = vperm.xlu2 %1950, %v1303_v48   ;;  %v1307_v48 = vld [vmem:[#allocation2 + $0x50] sm:$0xff] }
 0x351   : > { %1340 = vperm.xlu0 %1948, %v1301_v62  }
 0x371   : > { %v1126_v41 = vpop.permute.xlu2 %1125 }
 0x372   : > { %v1147_v49 = vmul.f32 %v1126_v41, %v1099_v33 }
 0x374   : > { %1155 = vst [vmem:[%s2610_s17 + $0x20] sm:$0xff] %v1147_v49  ;;  %v1311_v49 = vld [vmem:[#allocation2 + $0x70] sm:$0xff] }
 0x379   : > { %v1131_v20 = vpop.permute.xlu2 %1130 }
 0x37a   : > { %v1148_v50 = vmul.f32 %v1131_v20, %v1100_v45  ;;  %v1310_v20 = vld [vmem:[#allocation2 + $0x68] sm:$0xff] }
 0x37c   : > { %1156 = vst [vmem:[%s2610_s17 + $0x28] sm:$0xff] %v1148_v50 }
 0x382   : > { %v1210_v16 = vpop.permute.xlu2 %1209 }
 0x383   : > { %v1247_v38 = vmul.f32 %v1210_v16, %v1199_v34 }
 0x385   : > { %1255 = vst [vmem:[%s2612_s13] sm:$0xff] %v1247_v38 }
 0x38a   : > { %v1116_v54 = vpop.permute.xlu1 %1115  ;;  %v1225_v56 = vpop.permute.xlu2 %1224 }
 0x38b   : > { %v1145_v25 = vmul.f32 %v1116_v54, %v1097_v53  ;;  %v1106_v55 = vpop.permute.xlu0 %1105  ;;  %v1250_v58 = vmul.f32 %v1225_v56, %v1202_v10 }
 0x38c   : > { %v1143_v57 = vmul.f32 %v1106_v55, %v1095_v61 }
 0x38d   : > { %1153 = vst [vmem:[%s2610_s17 + $0x10] sm:$0xff] %v1145_v25 }
 0x38e   : > { %1151 = vst [vmem:[%s2610_s17] sm:$0xff] %v1143_v57 }
 0x38f   : > { %1258 = vst [vmem:[%s2612_s13 + $0x30] sm:$0xff] %v1250_v58 }
 0x392   : > { %v1121_v0 = vpop.permute.xlu1 %1120  ;;  %v1240_v52 = vpop.permute.xlu2 %1239 }
 0x393   : > { %v1146_v22 = vmul.f32 %v1121_v0, %v1098_v31  ;;  %v1111_v1 = vpop.permute.xlu0 %1110  ;;  %v1253_v2 = vmul.f32 %v1240_v52, %v1205_v30 }
 0x394   : > { %v1144_v18 = vmul.f32 %v1111_v1, %v1096_v13 }
 0x395   : > { %1154 = vst [vmem:[%s2610_s17 + $0x18] sm:$0xff] %v1146_v22 }
 0x396   : > { %1152 = vst [vmem:[%s2610_s17 + $0x8] sm:$0xff] %v1144_v18 }
 0x397   : > { %1261 = vst [vmem:[%s2612_s13 + $0x60] sm:$0xff] %v1253_v2 }
 0x39a   : > { %v1141_v5 = vpop.permute.xlu1 %1140  ;;  %v1321_v6 = vpop.permute.xlu2 %1320 }
 0x39b   : > { %v1150_v23 = vmul.f32 %v1141_v5, %v1102_v3  ;;  %v1354_v9 = vmul.f32 %v1321_v6, %v1306_v4  ;;  %v1136_v11 = vpop.permute.xlu0 %1135 }
 0x39c   : > { %v1149_v59 = vmul.f32 %v1136_v11, %v1101_v17 }
 0x39d   : > { %1158 = vst [vmem:[%s2610_s17 + $0x38] sm:$0xff] %v1150_v23 }
 0x39e   : > { %1362 = vst [vmem:[%s2612_s13 + $0x18] sm:$0xff] %v1354_v9 }
 0x39f   : > { %1157 = vst [vmem:[%s2610_s17 + $0x30] sm:$0xff] %v1149_v59 }
 0x3a2   : > { %v1220_v26 = vpop.permute.xlu1 %1219  ;;  %v1336_v19 = vpop.permute.xlu2 %1335 }
 0x3a3   : > { %v1249_v60 = vmul.f32 %v1220_v26, %v1201_v37  ;;  %v1357_v28 = vmul.f32 %v1336_v19, %v1309_v24  ;;  %v1215_v8 = vpop.permute.xlu0 %1214 }
 0x3a4   : > { %v1248_v12 = vmul.f32 %v1215_v8, %v1200_v27 }
 0x3a5   : > { %1257 = vst [vmem:[%s2612_s13 + $0x20] sm:$0xff] %v1249_v60 }
 0x3a6   : > { %1365 = vst [vmem:[%s2612_s13 + $0x48] sm:$0xff] %v1357_v28 }
 0x3a7   : > { %1256 = vst [vmem:[%s2612_s13 + $0x10] sm:$0xff] %v1248_v12 }
 0x3aa   : > { %v1235_v29 = vpop.permute.xlu1 %1234  ;;  %v1351_v39 = vpop.permute.xlu2 %1350 }
 0x3ab   : > { %v1252_v36 = vmul.f32 %v1235_v29, %v1204_v51  ;;  %v1360_v40 = vmul.f32 %v1351_v39, %v1312_v14  ;;  %v1230_v21 = vpop.permute.xlu0 %1229 }
 0x3ac   : > { %v1251_v43 = vmul.f32 %v1230_v21, %v1203_v32 }
 0x3ad   : > { %1260 = vst [vmem:[%s2612_s13 + $0x50] sm:$0xff] %v1252_v36 }
 0x3ae   : > { %1368 = vst [vmem:[%s2612_s13 + $0x78] sm:$0xff] %v1360_v40 }
 0x3af   : > { %1259 = vst [vmem:[%s2612_s13 + $0x40] sm:$0xff] %v1251_v43 }
 0x3b2   : > { %v1316_v42 = vpop.permute.xlu1 %1315 }
 0x3b3   : > { %v1353_v7 = vmul.f32 %v1316_v42, %v1305_v15  ;;  %v1245_v35 = vpop.permute.xlu0 %1244 }
 0x3b4   : > { %v1254_v44 = vmul.f32 %v1245_v35, %v1206_v63 }
 0x3b5   : > { %1361 = vst [vmem:[%s2612_s13 + $0x8] sm:$0xff] %v1353_v7 }
 0x3b6   : > { %1262 = vst [vmem:[%s2612_s13 + $0x70] sm:$0xff] %v1254_v44 }
 0x3ba   : > { %v1331_v47 = vpop.permute.xlu1 %1330 }
 0x3bb   : > { %v1356_v62 = vmul.f32 %v1331_v47, %v1308_v46  ;;  %v1326_v33 = vpop.permute.xlu0 %1325 }
 0x3bc   : > { %v1355_v41 = vmul.f32 %v1326_v33, %v1307_v48 }
 0x3bd   : > { %1364 = vst [vmem:[%s2612_s13 + $0x38] sm:$0xff] %v1356_v62 }
 0x3be   : > { %1363 = vst [vmem:[%s2612_s13 + $0x28] sm:$0xff] %v1355_v41 }
 0x3c2   : > { %v1346_v45 = vpop.permute.xlu1 %1345 }
 0x3c3   : > { %v1359_v50 = vmul.f32 %v1346_v45, %v1311_v49  ;;  %v1341_v34 = vpop.permute.xlu0 %1340 }
 0x3c4   : > { %v1358_v16 = vmul.f32 %v1341_v34, %v1310_v20 }
 0x3c5   : > { %1367 = vst [vmem:[%s2612_s13 + $0x68] sm:$0xff] %v1359_v50 }
 0x3c6   : > { %1366 = vst [vmem:[%s2612_s13 + $0x58] sm:$0xff] %v1358_v16 }
 0x3c7 PF: > { %s3247_s0 = sld [smem:[#allocation27_spill]]  ;;  %s1387_s2 = sshll.u32 %s2610_s17, 4  ;;  %s1388_s2 = int_to_ptr.vmem [resolvable:$true] %s1387_s2 }
 0x3c8   : > { %s3248_s9 = sld [smem:[#allocation38_spill]]  ;;  %s1370_s26 = scalar_lea.sflag [#allocation9], %s2581_s14 }
 0x3cd   : > { %s1736_s11 = sshll.u32 %s3247_s0, 6 }
 0x3ce   : > { %s1386_s27 = scalar_lea.hbm %s3248_s9, %s1736_s11  ;;  %s2139_s18 = scalar_lea.hbm %s3248_s9, 128 }
 0x3cf   : > { %s1389_s23 = sshll.u32 %s1386_s27, 4  ;;  %s1390_s23 = int_to_ptr.hbm [resolvable:$true] %s1389_s23 }
 0x3d0   : > { %s2133_s15 = sshra.s32 %s1390_s23, 4  ;;  %s2134_s15 = int_to_ptr.hbm [resolvable:$true] %s2133_s15 }
 0x3d1   : > { %s2135_s30 = scalar_lea.hbm %s2134_s15, 64  ;;  %p2140_p4 = scmp.lt.s32.totalorder %s2134_s15, %s3248_s9 }
 0x3d2   : > { %p2136_p11 = scmp.ne.s32.totalorder %s2134_s15, %s2135_s30  ;;  %p2141_p7 = scmp.lt.s32.totalorder %s2139_s18, %s2135_s30 }
 0x3d4   : > { %p2137_p3 = pnand %p2136_p11, %p2526_p9  ;;  %p2142_p10 = por %p2141_p7, %p2140_p4 }
 0x3d6   : > { %p2138_p0 = pneg %p2137_p3 }
 0x3d8   : > { %p2143_p13 = pnand %p2142_p10, %p2138_p0 }
 0x3da   : > { %2146 = shalt.err (!%p2143_p13)
}
 0x3db   : > { %s2316_s17 = smov 128   ;;  %s2317_s4 = smov 8  }
 0x3dc   : > { %1762 = dma.vmem_to_hbm [thread:$0]  (%p2526_p9), %s1388_s2, 1024, %s1390_s23, %s1370_s26, %s2316_s17, %s2316_s17, %s2317_s4  }
 0x3dd   : > { %s1737_s28 = sshll.u32 %s3247_s0, 7  ;;  %s1404_s1 = sshll.u32 %s2612_s13, 4  ;;  %s1405_s1 = int_to_ptr.vmem [resolvable:$true] %s1404_s1 }
 0x3de   : > { %s3249_s22 = sld [smem:[#allocation39_spill]]  ;;  %s1375_s30 = scalar_lea.sflag [#allocation17], %s2581_s14 }
 0x3e4   : > { %s3250_s10 = smov %s3249_s22  ;;  %s1403_s27 = scalar_lea.hbm %s3249_s22, %s1737_s28 }
 0x3e5   : > { %s1406_s15 = sshll.u32 %s1403_s27, 4  ;;  %s2167_s0 = scalar_lea.hbm %s3250_s10, 256  ;;  %s1407_s15 = int_to_ptr.hbm [resolvable:$true] %s1406_s15 }
 0x3e6   : > { %s2161_s7 = sshra.s32 %s1407_s15, 4  ;;  %s2162_s7 = int_to_ptr.hbm [resolvable:$true] %s2161_s7 }
 0x3e7   : > { %s2163_s18 = scalar_lea.hbm %s2162_s7, 128  ;;  %p2168_p2 = scmp.lt.s32.totalorder %s2162_s7, %s3250_s10 }
 0x3e8   : > { %p2164_p5 = scmp.ne.s32.totalorder %s2162_s7, %s2163_s18  ;;  %p2169_p8 = scmp.lt.s32.totalorder %s2167_s0, %s2163_s18 }
 0x3ea   : > { %p2165_p6 = pnand %p2164_p5, %p2526_p9  ;;  %p2170_p11 = por %p2169_p8, %p2168_p2 }
 0x3ec   : > { %p2166_p12 = pneg %p2165_p6 }
 0x3ee   : > { %p2171_p3 = pnand %p2170_p11, %p2166_p12 }
 0x3f0   : > { %2174 = shalt.err (!%p2171_p3)
}
 0x3f1   : > { %s2318_s14 = smov 256   ;;  %s2319_s23 = smov 16  }
 0x3f2   : > { %1763 = dma.vmem_to_hbm [thread:$0]  (%p2526_p9), %s1405_s1, 2048, %s1407_s15, %s1375_s30, %s2318_s14, %s2318_s14, %s2319_s23  }
 0x3f3 PF: > { %p1787_p0 = scmp.ge.s32.totalorder %s2305_s6, 2  ;;  %s1421_s26 = sand.u32 1, %s2277_s24  }
 0x3f4   : > { %s1422_s17 = scalar_lea.sflag [#allocation9], %s1421_s26 }
 0x3f5   : > { %p1780_p4 = pnand %p1787_p0, %p2530_p1 }
 0x3f7   : > { %p1781_p7 = pneg %p1780_p4 }
 0x3f9   : > { %2244 = dma.done.wait (%p1781_p7), %s1422_s17, 1024  }
 0x3fa   : > { %2246 = vsyncadd (%p1781_p7), %s1422_s17, 4294966272  ;;  %s1432_s4 = scalar_lea.sflag [#allocation17], %s1421_s26 }
 0x3fb   : > { %2248 = dma.done.wait (%p1781_p7), %s1432_s4, 2048  }
 0x3fc   : > { %2250 = vsyncadd (%p1781_p7), %s1432_s4, 4294965248  ;;  %s31_s6 = sadd.s32 1, %s2305_s6   ;;  %s3252_s21 = sld [smem:[#allocation23_spill]] }
 0x3fd   : > { %p3106_p10 = scmp.ge.s32.totalorder %s31_s6, 6   ;;  %s3253_s22 = sld [smem:[#allocation24_spill]] }
 0x3fe   : > { %s3254_s23 = sld [smem:[#allocation32_spill]]  ;;  %s3260_s18 = smov %s2257_s19 }
 0x3ff   : > { %s3255_s12 = sld [smem:[#allocation25_spill]]  ;;  %s3261_s19 = smov %s2261_s20 }
 0x400   : > { %s3256_s26 = sld [smem:[#allocation33_spill]]  ;;  %s3262_s20 = smov %s2559_s16 }
 0x401   : > { %s3257_s28 = sld [smem:[#allocation28_spill]]  ;;  %s3263_s24 = smov %s2281_s25 }
 0x402   : > { %s3258_s1 = sld [smem:[#allocation29_spill]]  ;;  %s3265_s27 = smov %s2297_s29 }
 0x403   : > { %s3259_s30 = sld [smem:[#allocation30_spill]] }
 0x404   :  { %30 = sbr.rel (!%p3106_p10) target bundleno = 23 (0x17), region = 147 }
 0x405   : > { %s3264_s25 = smov %s3255_s12 }
 0x408   : > { %s3266_s29 = smov %s3258_s1 }
 0x409   :  { %1438 = vsyncpa [#allocation8], 1 }
 0x40a   :  { %1440 = vsyncpa [#allocation8 + $0x1], 1 }
 0x40b   :  { %1441 = vsyncpa [#allocation11], 1 }
 0x40c   :  { %1443 = vsyncpa [#allocation11 + $0x1], 1 }
 0x40d   :  { %1444 = vsyncpa [#allocation14], 1 }
 0x40e   :  { %1446 = vsyncpa [#allocation14 + $0x1], 1 }
 0x40f   :  { %1447 = vsyncpa [#allocation9], 1 }
 0x410   :  { %1449 = vsyncpa [#allocation9 + $0x1], 1 }
 0x411   :  { %1450 = vsyncpa [#allocation17], 1 }
 0x412   :  { %1452 = vsyncpa [#allocation17 + $0x1], 1 }

</bundles_post_ra>
